<compile_context>
chip_gen: v7x
topology: tpu7x:2x2x1
jax: 0.10.0
libtpu: 0.0.40
codegen_flags: <defaults>
</compile_context>

<pallas_src>
import jax
import jax.numpy as jnp
from jax import lax
from jax.experimental import pallas as pl
from jax.experimental.pallas import tpu as pltpu

KH = KW = 3
C_IN = 3
C_OUT = 6
TAPS = C_IN * KH * KW  # 27


def _make_conv_kernel(width):
    """Build the conv kernel for a given (static) input width."""

    def kernel(x_ref, w_ref, b_ref, o_ref):
        # x_ref: (C_IN, B_TILE, H*W)                   VMEM
        # w_ref: (C_OUT * C_IN * KH * KW,) flat OIHW   SMEM
        # b_ref: (C_OUT,)                              SMEM
        # o_ref: (C_OUT, B_TILE, FLAT)                 VMEM
        b_tile = x_ref.shape[1]
        flat = o_ref.shape[2]

        # Hoist all scalar loads once (162 weights + 6 biases).
        wv = [w_ref[i] for i in range(C_OUT * TAPS)]
        bv = [b_ref[i] for i in range(C_OUT)]

        # Six live accumulators; taps are generated one at a time so only
        # ~8 planes are ever live (accs + current plane + current tap).
        accs = [jnp.zeros((b_tile, flat), dtype=jnp.float32)
                for _ in range(C_OUT)]

        for ci in range(C_IN):
            plane = x_ref[ci].astype(jnp.float32)          # (B_TILE, H*W)
            for kh in range(KH):
                for kw in range(KW):
                    s = kh * width + kw
                    tap = plane[:, s:s + flat]             # (B_TILE, FLAT)
                    t = ci * (KH * KW) + kh * KW + kw
                    for co in range(C_OUT):
                        accs[co] = accs[co] + wv[co * TAPS + t] * tap

        for co in range(C_OUT):
            o_ref[co] = (accs[co] + bv[co]).astype(o_ref.dtype)

    return kernel


def _pick_batch_tile(n, per_image_bytes):
    """Single grid step for small batches; otherwise the largest
    sublane-aligned divisor of n under a ~4 MiB block budget (safe with
    double buffering under a 32 MiB VMEM limit on v5e/v6e/v7x)."""
    cap_imgs = max(1, (4 * 1024 * 1024) // max(1, per_image_bytes))
    if n <= cap_imgs:
        return n
    best = 0
    for bt in range(8, min(n, cap_imgs) + 1, 8):
        if n % bt == 0:
            best = bt
    return best if best else n


def tudui_forward(x_nchw, weight, bias):
    """x_nchw: (N, 3, H, W); weight: (6, 3, 3, 3); bias: (6,).

    Returns (N, 6, H-2, W-2) in NCHW, matching PyTorch Conv2d semantics.
    """
    n, c, h, w = x_nchw.shape
    assert c == C_IN
    hout, wout = h - KH + 1, w - KW + 1
    hw = h * w
    flat = (hout - 1) * w + wout      # last valid flattened output index + 1

    per_image_bytes = 4 * (C_IN * hw + C_OUT * flat)
    b_tile = _pick_batch_tile(n, per_image_bytes)

    # Layout plumbing (wrapper side): channels outermost, batch on sublanes,
    # flattened spatial on the 128-lane axis.
    x_flat = jnp.transpose(x_nchw, (1, 0, 2, 3)).reshape(C_IN, n, hw)
    w_flat = weight.reshape(-1).astype(jnp.float32)        # (162,) OIHW order
    b_vec = bias.astype(jnp.float32)                       # (6,)

    out_flat = pl.pallas_call(
        _make_conv_kernel(w),
        out_shape=jax.ShapeDtypeStruct((C_OUT, n, flat), x_nchw.dtype),
        grid=(n // b_tile,),
        in_specs=[
            pl.BlockSpec((C_IN, b_tile, hw), lambda i: (0, i, 0)),
            pl.BlockSpec(memory_space=pltpu.MemorySpace.SMEM),   # weights
            pl.BlockSpec(memory_space=pltpu.MemorySpace.SMEM),   # bias
        ],
        out_specs=pl.BlockSpec((C_OUT, b_tile, flat), lambda i: (0, i, 0)),
        compiler_params=pltpu.CompilerParams(
            dimension_semantics=("parallel",),
            vmem_limit_bytes=32 * 1024 * 1024,
        ),
    )(x_flat, w_flat, b_vec)

    # Un-flatten: pad the flat axis to a whole number of W-wide rows,
    # reshape, crop the (invalid) tail columns, and go back to NCHW.
    pad_tail = hout * w - flat            # == KW - 1
    y = jnp.pad(out_flat, ((0, 0), (0, 0), (0, pad_tail)))
    y = y.reshape(C_OUT, n, hout, w)[:, :, :, :wout]
    return jnp.transpose(y, (1, 0, 2, 3))


def reference_conv(x_nchw, weight, bias):
    """Pure-JAX reference (lax conv) for correctness check."""
    y = lax.conv_general_dilated(
        x_nchw, weight,
        window_strides=(1, 1), padding="VALID",
        dimension_numbers=("NCHW", "OIHW", "NCHW"),
    )
    return y + bias.reshape(1, C_OUT, 1, 1)


if __name__ == "__main__":
    key = jax.random.PRNGKey(0)
    k_x, k_w, k_b = jax.random.split(key, 3)

    # Small shapes consistent with Conv2d(3 -> 6, k=3): batch=2, 3x16x16 input.
    x = jax.random.normal(k_x, (2, C_IN, 16, 16), dtype=jnp.float32)
    fan_in = C_IN * KH * KW
    bound = 1.0 / (fan_in ** 0.5)
    weight = jax.random.uniform(k_w, (C_OUT, C_IN, KH, KW), jnp.float32, -bound, bound)
    bias = jax.random.uniform(k_b, (C_OUT,), jnp.float32, -bound, bound)

    y = tudui_forward(x, weight, bias)
    jax.block_until_ready(y)

    y_ref = reference_conv(x, weight, bias)
    assert y.shape == (2, C_OUT, 14, 14), y.shape
    assert jnp.allclose(y, y_ref, atol=1e-4, rtol=1e-4), "mismatch vs reference"

    print("KERNEL_OK")
</pallas_src>

<mosaic_0001>
module attributes {stable_mosaic.version = 11 : i64} {
  func.func @kernel(%arg0: i32, %arg1: memref<3x2x256xf32, #tpu.memory_space<vmem>>, %arg2: memref<162xf32, #tpu.memory_space<smem>>, %arg3: memref<6xf32, #tpu.memory_space<smem>>, %arg4: memref<6x2x222xf32, #tpu.memory_space<vmem>>) attributes {dimension_semantics = [#tpu.dimension_semantics<parallel>], iteration_bounds = array<i64: 1>, scalar_prefetch = 0 : i64, scratch_operands = 0 : i64, tpu.core_type = #tpu.core_type<tc>, window_params = [{transform_indices = @transform_0, window_bounds = array<i64: 3, 2, 256>}, {transform_indices = @transform_1, window_bounds = array<i64: 162>}, {transform_indices = @transform_2, window_bounds = array<i64: 6>}, {transform_indices = @transform_3, window_bounds = array<i64: 6, 2, 222>}]} {
    %c0 = arith.constant 0 : index
    %0 = memref.load %arg2[%c0] : memref<162xf32, #tpu.memory_space<smem>>
    %c1 = arith.constant 1 : index
    %1 = memref.load %arg2[%c1] : memref<162xf32, #tpu.memory_space<smem>>
    %c2 = arith.constant 2 : index
    %2 = memref.load %arg2[%c2] : memref<162xf32, #tpu.memory_space<smem>>
    %c3 = arith.constant 3 : index
    %3 = memref.load %arg2[%c3] : memref<162xf32, #tpu.memory_space<smem>>
    %c4 = arith.constant 4 : index
    %4 = memref.load %arg2[%c4] : memref<162xf32, #tpu.memory_space<smem>>
    %c5 = arith.constant 5 : index
    %5 = memref.load %arg2[%c5] : memref<162xf32, #tpu.memory_space<smem>>
    %c6 = arith.constant 6 : index
    %6 = memref.load %arg2[%c6] : memref<162xf32, #tpu.memory_space<smem>>
    %c7 = arith.constant 7 : index
    %7 = memref.load %arg2[%c7] : memref<162xf32, #tpu.memory_space<smem>>
    %c8 = arith.constant 8 : index
    %8 = memref.load %arg2[%c8] : memref<162xf32, #tpu.memory_space<smem>>
    %c9 = arith.constant 9 : index
    %9 = memref.load %arg2[%c9] : memref<162xf32, #tpu.memory_space<smem>>
    %c10 = arith.constant 10 : index
    %10 = memref.load %arg2[%c10] : memref<162xf32, #tpu.memory_space<smem>>
    %c11 = arith.constant 11 : index
    %11 = memref.load %arg2[%c11] : memref<162xf32, #tpu.memory_space<smem>>
    %c12 = arith.constant 12 : index
    %12 = memref.load %arg2[%c12] : memref<162xf32, #tpu.memory_space<smem>>
    %c13 = arith.constant 13 : index
    %13 = memref.load %arg2[%c13] : memref<162xf32, #tpu.memory_space<smem>>
    %c14 = arith.constant 14 : index
    %14 = memref.load %arg2[%c14] : memref<162xf32, #tpu.memory_space<smem>>
    %c15 = arith.constant 15 : index
    %15 = memref.load %arg2[%c15] : memref<162xf32, #tpu.memory_space<smem>>
    %c16 = arith.constant 16 : index
    %16 = memref.load %arg2[%c16] : memref<162xf32, #tpu.memory_space<smem>>
    %c17 = arith.constant 17 : index
    %17 = memref.load %arg2[%c17] : memref<162xf32, #tpu.memory_space<smem>>
    %c18 = arith.constant 18 : index
    %18 = memref.load %arg2[%c18] : memref<162xf32, #tpu.memory_space<smem>>
    %c19 = arith.constant 19 : index
    %19 = memref.load %arg2[%c19] : memref<162xf32, #tpu.memory_space<smem>>
    %c20 = arith.constant 20 : index
    %20 = memref.load %arg2[%c20] : memref<162xf32, #tpu.memory_space<smem>>
    %c21 = arith.constant 21 : index
    %21 = memref.load %arg2[%c21] : memref<162xf32, #tpu.memory_space<smem>>
    %c22 = arith.constant 22 : index
    %22 = memref.load %arg2[%c22] : memref<162xf32, #tpu.memory_space<smem>>
    %c23 = arith.constant 23 : index
    %23 = memref.load %arg2[%c23] : memref<162xf32, #tpu.memory_space<smem>>
    %c24 = arith.constant 24 : index
    %24 = memref.load %arg2[%c24] : memref<162xf32, #tpu.memory_space<smem>>
    %c25 = arith.constant 25 : index
    %25 = memref.load %arg2[%c25] : memref<162xf32, #tpu.memory_space<smem>>
    %c26 = arith.constant 26 : index
    %26 = memref.load %arg2[%c26] : memref<162xf32, #tpu.memory_space<smem>>
    %c27 = arith.constant 27 : index
    %27 = memref.load %arg2[%c27] : memref<162xf32, #tpu.memory_space<smem>>
    %c28 = arith.constant 28 : index
    %28 = memref.load %arg2[%c28] : memref<162xf32, #tpu.memory_space<smem>>
    %c29 = arith.constant 29 : index
    %29 = memref.load %arg2[%c29] : memref<162xf32, #tpu.memory_space<smem>>
    %c30 = arith.constant 30 : index
    %30 = memref.load %arg2[%c30] : memref<162xf32, #tpu.memory_space<smem>>
    %c31 = arith.constant 31 : index
    %31 = memref.load %arg2[%c31] : memref<162xf32, #tpu.memory_space<smem>>
    %c32 = arith.constant 32 : index
    %32 = memref.load %arg2[%c32] : memref<162xf32, #tpu.memory_space<smem>>
    %c33 = arith.constant 33 : index
    %33 = memref.load %arg2[%c33] : memref<162xf32, #tpu.memory_space<smem>>
    %c34 = arith.constant 34 : index
    %34 = memref.load %arg2[%c34] : memref<162xf32, #tpu.memory_space<smem>>
    %c35 = arith.constant 35 : index
    %35 = memref.load %arg2[%c35] : memref<162xf32, #tpu.memory_space<smem>>
    %c36 = arith.constant 36 : index
    %36 = memref.load %arg2[%c36] : memref<162xf32, #tpu.memory_space<smem>>
    %c37 = arith.constant 37 : index
    %37 = memref.load %arg2[%c37] : memref<162xf32, #tpu.memory_space<smem>>
    %c38 = arith.constant 38 : index
    %38 = memref.load %arg2[%c38] : memref<162xf32, #tpu.memory_space<smem>>
    %c39 = arith.constant 39 : index
    %39 = memref.load %arg2[%c39] : memref<162xf32, #tpu.memory_space<smem>>
    %c40 = arith.constant 40 : index
    %40 = memref.load %arg2[%c40] : memref<162xf32, #tpu.memory_space<smem>>
    %c41 = arith.constant 41 : index
    %41 = memref.load %arg2[%c41] : memref<162xf32, #tpu.memory_space<smem>>
    %c42 = arith.constant 42 : index
    %42 = memref.load %arg2[%c42] : memref<162xf32, #tpu.memory_space<smem>>
    %c43 = arith.constant 43 : index
    %43 = memref.load %arg2[%c43] : memref<162xf32, #tpu.memory_space<smem>>
    %c44 = arith.constant 44 : index
    %44 = memref.load %arg2[%c44] : memref<162xf32, #tpu.memory_space<smem>>
    %c45 = arith.constant 45 : index
    %45 = memref.load %arg2[%c45] : memref<162xf32, #tpu.memory_space<smem>>
    %c46 = arith.constant 46 : index
    %46 = memref.load %arg2[%c46] : memref<162xf32, #tpu.memory_space<smem>>
    %c47 = arith.constant 47 : index
    %47 = memref.load %arg2[%c47] : memref<162xf32, #tpu.memory_space<smem>>
    %c48 = arith.constant 48 : index
    %48 = memref.load %arg2[%c48] : memref<162xf32, #tpu.memory_space<smem>>
    %c49 = arith.constant 49 : index
    %49 = memref.load %arg2[%c49] : memref<162xf32, #tpu.memory_space<smem>>
    %c50 = arith.constant 50 : index
    %50 = memref.load %arg2[%c50] : memref<162xf32, #tpu.memory_space<smem>>
    %c51 = arith.constant 51 : index
    %51 = memref.load %arg2[%c51] : memref<162xf32, #tpu.memory_space<smem>>
    %c52 = arith.constant 52 : index
    %52 = memref.load %arg2[%c52] : memref<162xf32, #tpu.memory_space<smem>>
    %c53 = arith.constant 53 : index
    %53 = memref.load %arg2[%c53] : memref<162xf32, #tpu.memory_space<smem>>
    %c54 = arith.constant 54 : index
    %54 = memref.load %arg2[%c54] : memref<162xf32, #tpu.memory_space<smem>>
    %c55 = arith.constant 55 : index
    %55 = memref.load %arg2[%c55] : memref<162xf32, #tpu.memory_space<smem>>
    %c56 = arith.constant 56 : index
    %56 = memref.load %arg2[%c56] : memref<162xf32, #tpu.memory_space<smem>>
    %c57 = arith.constant 57 : index
    %57 = memref.load %arg2[%c57] : memref<162xf32, #tpu.memory_space<smem>>
    %c58 = arith.constant 58 : index
    %58 = memref.load %arg2[%c58] : memref<162xf32, #tpu.memory_space<smem>>
    %c59 = arith.constant 59 : index
    %59 = memref.load %arg2[%c59] : memref<162xf32, #tpu.memory_space<smem>>
    %c60 = arith.constant 60 : index
    %60 = memref.load %arg2[%c60] : memref<162xf32, #tpu.memory_space<smem>>
    %c61 = arith.constant 61 : index
    %61 = memref.load %arg2[%c61] : memref<162xf32, #tpu.memory_space<smem>>
    %c62 = arith.constant 62 : index
    %62 = memref.load %arg2[%c62] : memref<162xf32, #tpu.memory_space<smem>>
    %c63 = arith.constant 63 : index
    %63 = memref.load %arg2[%c63] : memref<162xf32, #tpu.memory_space<smem>>
    %c64 = arith.constant 64 : index
    %64 = memref.load %arg2[%c64] : memref<162xf32, #tpu.memory_space<smem>>
    %c65 = arith.constant 65 : index
    %65 = memref.load %arg2[%c65] : memref<162xf32, #tpu.memory_space<smem>>
    %c66 = arith.constant 66 : index
    %66 = memref.load %arg2[%c66] : memref<162xf32, #tpu.memory_space<smem>>
    %c67 = arith.constant 67 : index
    %67 = memref.load %arg2[%c67] : memref<162xf32, #tpu.memory_space<smem>>
    %c68 = arith.constant 68 : index
    %68 = memref.load %arg2[%c68] : memref<162xf32, #tpu.memory_space<smem>>
    %c69 = arith.constant 69 : index
    %69 = memref.load %arg2[%c69] : memref<162xf32, #tpu.memory_space<smem>>
    %c70 = arith.constant 70 : index
    %70 = memref.load %arg2[%c70] : memref<162xf32, #tpu.memory_space<smem>>
    %c71 = arith.constant 71 : index
    %71 = memref.load %arg2[%c71] : memref<162xf32, #tpu.memory_space<smem>>
    %c72 = arith.constant 72 : index
    %72 = memref.load %arg2[%c72] : memref<162xf32, #tpu.memory_space<smem>>
    %c73 = arith.constant 73 : index
    %73 = memref.load %arg2[%c73] : memref<162xf32, #tpu.memory_space<smem>>
    %c74 = arith.constant 74 : index
    %74 = memref.load %arg2[%c74] : memref<162xf32, #tpu.memory_space<smem>>
    %c75 = arith.constant 75 : index
    %75 = memref.load %arg2[%c75] : memref<162xf32, #tpu.memory_space<smem>>
    %c76 = arith.constant 76 : index
    %76 = memref.load %arg2[%c76] : memref<162xf32, #tpu.memory_space<smem>>
    %c77 = arith.constant 77 : index
    %77 = memref.load %arg2[%c77] : memref<162xf32, #tpu.memory_space<smem>>
    %c78 = arith.constant 78 : index
    %78 = memref.load %arg2[%c78] : memref<162xf32, #tpu.memory_space<smem>>
    %c79 = arith.constant 79 : index
    %79 = memref.load %arg2[%c79] : memref<162xf32, #tpu.memory_space<smem>>
    %c80 = arith.constant 80 : index
    %80 = memref.load %arg2[%c80] : memref<162xf32, #tpu.memory_space<smem>>
    %c81 = arith.constant 81 : index
    %81 = memref.load %arg2[%c81] : memref<162xf32, #tpu.memory_space<smem>>
    %c82 = arith.constant 82 : index
    %82 = memref.load %arg2[%c82] : memref<162xf32, #tpu.memory_space<smem>>
    %c83 = arith.constant 83 : index
    %83 = memref.load %arg2[%c83] : memref<162xf32, #tpu.memory_space<smem>>
    %c84 = arith.constant 84 : index
    %84 = memref.load %arg2[%c84] : memref<162xf32, #tpu.memory_space<smem>>
    %c85 = arith.constant 85 : index
    %85 = memref.load %arg2[%c85] : memref<162xf32, #tpu.memory_space<smem>>
    %c86 = arith.constant 86 : index
    %86 = memref.load %arg2[%c86] : memref<162xf32, #tpu.memory_space<smem>>
    %c87 = arith.constant 87 : index
    %87 = memref.load %arg2[%c87] : memref<162xf32, #tpu.memory_space<smem>>
    %c88 = arith.constant 88 : index
    %88 = memref.load %arg2[%c88] : memref<162xf32, #tpu.memory_space<smem>>
    %c89 = arith.constant 89 : index
    %89 = memref.load %arg2[%c89] : memref<162xf32, #tpu.memory_space<smem>>
    %c90 = arith.constant 90 : index
    %90 = memref.load %arg2[%c90] : memref<162xf32, #tpu.memory_space<smem>>
    %c91 = arith.constant 91 : index
    %91 = memref.load %arg2[%c91] : memref<162xf32, #tpu.memory_space<smem>>
    %c92 = arith.constant 92 : index
    %92 = memref.load %arg2[%c92] : memref<162xf32, #tpu.memory_space<smem>>
    %c93 = arith.constant 93 : index
    %93 = memref.load %arg2[%c93] : memref<162xf32, #tpu.memory_space<smem>>
    %c94 = arith.constant 94 : index
    %94 = memref.load %arg2[%c94] : memref<162xf32, #tpu.memory_space<smem>>
    %c95 = arith.constant 95 : index
    %95 = memref.load %arg2[%c95] : memref<162xf32, #tpu.memory_space<smem>>
    %c96 = arith.constant 96 : index
    %96 = memref.load %arg2[%c96] : memref<162xf32, #tpu.memory_space<smem>>
    %c97 = arith.constant 97 : index
    %97 = memref.load %arg2[%c97] : memref<162xf32, #tpu.memory_space<smem>>
    %c98 = arith.constant 98 : index
    %98 = memref.load %arg2[%c98] : memref<162xf32, #tpu.memory_space<smem>>
    %c99 = arith.constant 99 : index
    %99 = memref.load %arg2[%c99] : memref<162xf32, #tpu.memory_space<smem>>
    %c100 = arith.constant 100 : index
    %100 = memref.load %arg2[%c100] : memref<162xf32, #tpu.memory_space<smem>>
    %c101 = arith.constant 101 : index
    %101 = memref.load %arg2[%c101] : memref<162xf32, #tpu.memory_space<smem>>
    %c102 = arith.constant 102 : index
    %102 = memref.load %arg2[%c102] : memref<162xf32, #tpu.memory_space<smem>>
    %c103 = arith.constant 103 : index
    %103 = memref.load %arg2[%c103] : memref<162xf32, #tpu.memory_space<smem>>
    %c104 = arith.constant 104 : index
    %104 = memref.load %arg2[%c104] : memref<162xf32, #tpu.memory_space<smem>>
    %c105 = arith.constant 105 : index
    %105 = memref.load %arg2[%c105] : memref<162xf32, #tpu.memory_space<smem>>
    %c106 = arith.constant 106 : index
    %106 = memref.load %arg2[%c106] : memref<162xf32, #tpu.memory_space<smem>>
    %c107 = arith.constant 107 : index
    %107 = memref.load %arg2[%c107] : memref<162xf32, #tpu.memory_space<smem>>
    %c108 = arith.constant 108 : index
    %108 = memref.load %arg2[%c108] : memref<162xf32, #tpu.memory_space<smem>>
    %c109 = arith.constant 109 : index
    %109 = memref.load %arg2[%c109] : memref<162xf32, #tpu.memory_space<smem>>
    %c110 = arith.constant 110 : index
    %110 = memref.load %arg2[%c110] : memref<162xf32, #tpu.memory_space<smem>>
    %c111 = arith.constant 111 : index
    %111 = memref.load %arg2[%c111] : memref<162xf32, #tpu.memory_space<smem>>
    %c112 = arith.constant 112 : index
    %112 = memref.load %arg2[%c112] : memref<162xf32, #tpu.memory_space<smem>>
    %c113 = arith.constant 113 : index
    %113 = memref.load %arg2[%c113] : memref<162xf32, #tpu.memory_space<smem>>
    %c114 = arith.constant 114 : index
    %114 = memref.load %arg2[%c114] : memref<162xf32, #tpu.memory_space<smem>>
    %c115 = arith.constant 115 : index
    %115 = memref.load %arg2[%c115] : memref<162xf32, #tpu.memory_space<smem>>
    %c116 = arith.constant 116 : index
    %116 = memref.load %arg2[%c116] : memref<162xf32, #tpu.memory_space<smem>>
    %c117 = arith.constant 117 : index
    %117 = memref.load %arg2[%c117] : memref<162xf32, #tpu.memory_space<smem>>
    %c118 = arith.constant 118 : index
    %118 = memref.load %arg2[%c118] : memref<162xf32, #tpu.memory_space<smem>>
    %c119 = arith.constant 119 : index
    %119 = memref.load %arg2[%c119] : memref<162xf32, #tpu.memory_space<smem>>
    %c120 = arith.constant 120 : index
    %120 = memref.load %arg2[%c120] : memref<162xf32, #tpu.memory_space<smem>>
    %c121 = arith.constant 121 : index
    %121 = memref.load %arg2[%c121] : memref<162xf32, #tpu.memory_space<smem>>
    %c122 = arith.constant 122 : index
    %122 = memref.load %arg2[%c122] : memref<162xf32, #tpu.memory_space<smem>>
    %c123 = arith.constant 123 : index
    %123 = memref.load %arg2[%c123] : memref<162xf32, #tpu.memory_space<smem>>
    %c124 = arith.constant 124 : index
    %124 = memref.load %arg2[%c124] : memref<162xf32, #tpu.memory_space<smem>>
    %c125 = arith.constant 125 : index
    %125 = memref.load %arg2[%c125] : memref<162xf32, #tpu.memory_space<smem>>
    %c126 = arith.constant 126 : index
    %126 = memref.load %arg2[%c126] : memref<162xf32, #tpu.memory_space<smem>>
    %c127 = arith.constant 127 : index
    %127 = memref.load %arg2[%c127] : memref<162xf32, #tpu.memory_space<smem>>
    %c128 = arith.constant 128 : index
    %128 = memref.load %arg2[%c128] : memref<162xf32, #tpu.memory_space<smem>>
    %c129 = arith.constant 129 : index
    %129 = memref.load %arg2[%c129] : memref<162xf32, #tpu.memory_space<smem>>
    %c130 = arith.constant 130 : index
    %130 = memref.load %arg2[%c130] : memref<162xf32, #tpu.memory_space<smem>>
    %c131 = arith.constant 131 : index
    %131 = memref.load %arg2[%c131] : memref<162xf32, #tpu.memory_space<smem>>
    %c132 = arith.constant 132 : index
    %132 = memref.load %arg2[%c132] : memref<162xf32, #tpu.memory_space<smem>>
    %c133 = arith.constant 133 : index
    %133 = memref.load %arg2[%c133] : memref<162xf32, #tpu.memory_space<smem>>
    %c134 = arith.constant 134 : index
    %134 = memref.load %arg2[%c134] : memref<162xf32, #tpu.memory_space<smem>>
    %c135 = arith.constant 135 : index
    %135 = memref.load %arg2[%c135] : memref<162xf32, #tpu.memory_space<smem>>
    %c136 = arith.constant 136 : index
    %136 = memref.load %arg2[%c136] : memref<162xf32, #tpu.memory_space<smem>>
    %c137 = arith.constant 137 : index
    %137 = memref.load %arg2[%c137] : memref<162xf32, #tpu.memory_space<smem>>
    %c138 = arith.constant 138 : index
    %138 = memref.load %arg2[%c138] : memref<162xf32, #tpu.memory_space<smem>>
    %c139 = arith.constant 139 : index
    %139 = memref.load %arg2[%c139] : memref<162xf32, #tpu.memory_space<smem>>
    %c140 = arith.constant 140 : index
    %140 = memref.load %arg2[%c140] : memref<162xf32, #tpu.memory_space<smem>>
    %c141 = arith.constant 141 : index
    %141 = memref.load %arg2[%c141] : memref<162xf32, #tpu.memory_space<smem>>
    %c142 = arith.constant 142 : index
    %142 = memref.load %arg2[%c142] : memref<162xf32, #tpu.memory_space<smem>>
    %c143 = arith.constant 143 : index
    %143 = memref.load %arg2[%c143] : memref<162xf32, #tpu.memory_space<smem>>
    %c144 = arith.constant 144 : index
    %144 = memref.load %arg2[%c144] : memref<162xf32, #tpu.memory_space<smem>>
    %c145 = arith.constant 145 : index
    %145 = memref.load %arg2[%c145] : memref<162xf32, #tpu.memory_space<smem>>
    %c146 = arith.constant 146 : index
    %146 = memref.load %arg2[%c146] : memref<162xf32, #tpu.memory_space<smem>>
    %c147 = arith.constant 147 : index
    %147 = memref.load %arg2[%c147] : memref<162xf32, #tpu.memory_space<smem>>
    %c148 = arith.constant 148 : index
    %148 = memref.load %arg2[%c148] : memref<162xf32, #tpu.memory_space<smem>>
    %c149 = arith.constant 149 : index
    %149 = memref.load %arg2[%c149] : memref<162xf32, #tpu.memory_space<smem>>
    %c150 = arith.constant 150 : index
    %150 = memref.load %arg2[%c150] : memref<162xf32, #tpu.memory_space<smem>>
    %c151 = arith.constant 151 : index
    %151 = memref.load %arg2[%c151] : memref<162xf32, #tpu.memory_space<smem>>
    %c152 = arith.constant 152 : index
    %152 = memref.load %arg2[%c152] : memref<162xf32, #tpu.memory_space<smem>>
    %c153 = arith.constant 153 : index
    %153 = memref.load %arg2[%c153] : memref<162xf32, #tpu.memory_space<smem>>
    %c154 = arith.constant 154 : index
    %154 = memref.load %arg2[%c154] : memref<162xf32, #tpu.memory_space<smem>>
    %c155 = arith.constant 155 : index
    %155 = memref.load %arg2[%c155] : memref<162xf32, #tpu.memory_space<smem>>
    %c156 = arith.constant 156 : index
    %156 = memref.load %arg2[%c156] : memref<162xf32, #tpu.memory_space<smem>>
    %c157 = arith.constant 157 : index
    %157 = memref.load %arg2[%c157] : memref<162xf32, #tpu.memory_space<smem>>
    %c158 = arith.constant 158 : index
    %158 = memref.load %arg2[%c158] : memref<162xf32, #tpu.memory_space<smem>>
    %c159 = arith.constant 159 : index
    %159 = memref.load %arg2[%c159] : memref<162xf32, #tpu.memory_space<smem>>
    %c160 = arith.constant 160 : index
    %160 = memref.load %arg2[%c160] : memref<162xf32, #tpu.memory_space<smem>>
    %c161 = arith.constant 161 : index
    %161 = memref.load %arg2[%c161] : memref<162xf32, #tpu.memory_space<smem>>
    %c0_0 = arith.constant 0 : index
    %162 = memref.load %arg3[%c0_0] : memref<6xf32, #tpu.memory_space<smem>>
    %c1_1 = arith.constant 1 : index
    %163 = memref.load %arg3[%c1_1] : memref<6xf32, #tpu.memory_space<smem>>
    %c2_2 = arith.constant 2 : index
    %164 = memref.load %arg3[%c2_2] : memref<6xf32, #tpu.memory_space<smem>>
    %c3_3 = arith.constant 3 : index
    %165 = memref.load %arg3[%c3_3] : memref<6xf32, #tpu.memory_space<smem>>
    %c4_4 = arith.constant 4 : index
    %166 = memref.load %arg3[%c4_4] : memref<6xf32, #tpu.memory_space<smem>>
    %c5_5 = arith.constant 5 : index
    %167 = memref.load %arg3[%c5_5] : memref<6xf32, #tpu.memory_space<smem>>
    %cst = arith.constant 0.000000e+00 : f32
    %168 = vector.broadcast %cst : f32 to vector<2x222xf32>
    %cst_6 = arith.constant 0.000000e+00 : f32
    %169 = vector.broadcast %cst_6 : f32 to vector<2x222xf32>
    %cst_7 = arith.constant 0.000000e+00 : f32
    %170 = vector.broadcast %cst_7 : f32 to vector<2x222xf32>
    %cst_8 = arith.constant 0.000000e+00 : f32
    %171 = vector.broadcast %cst_8 : f32 to vector<2x222xf32>
    %cst_9 = arith.constant 0.000000e+00 : f32
    %172 = vector.broadcast %cst_9 : f32 to vector<2x222xf32>
    %cst_10 = arith.constant 0.000000e+00 : f32
    %173 = vector.broadcast %cst_10 : f32 to vector<2x222xf32>
    %c0_11 = arith.constant 0 : index
    %c0_12 = arith.constant 0 : index
    %c0_13 = arith.constant 0 : index
    %174 = vector.load %arg1[%c0_11, %c0_12, %c0_13] : memref<3x2x256xf32, #tpu.memory_space<vmem>>, vector<1x2x256xf32>
    %175 = vector.shape_cast %174 : vector<1x2x256xf32> to vector<2x256xf32>
    %176 = vector.extract_strided_slice %175 {offsets = [0, 0], sizes = [2, 222], strides = [1, 1]} : vector<2x256xf32> to vector<2x222xf32>
    %177 = vector.broadcast %0 : f32 to vector<2x222xf32>
    %178 = arith.mulf %177, %176 : vector<2x222xf32>
    %179 = arith.addf %168, %178 : vector<2x222xf32>
    %180 = vector.broadcast %27 : f32 to vector<2x222xf32>
    %181 = arith.mulf %180, %176 : vector<2x222xf32>
    %182 = arith.addf %169, %181 : vector<2x222xf32>
    %183 = vector.broadcast %54 : f32 to vector<2x222xf32>
    %184 = arith.mulf %183, %176 : vector<2x222xf32>
    %185 = arith.addf %170, %184 : vector<2x222xf32>
    %186 = vector.broadcast %81 : f32 to vector<2x222xf32>
    %187 = arith.mulf %186, %176 : vector<2x222xf32>
    %188 = arith.addf %171, %187 : vector<2x222xf32>
    %189 = vector.broadcast %108 : f32 to vector<2x222xf32>
    %190 = arith.mulf %189, %176 : vector<2x222xf32>
    %191 = arith.addf %172, %190 : vector<2x222xf32>
    %192 = vector.broadcast %135 : f32 to vector<2x222xf32>
    %193 = arith.mulf %192, %176 : vector<2x222xf32>
    %194 = arith.addf %173, %193 : vector<2x222xf32>
    %195 = vector.extract_strided_slice %175 {offsets = [0, 1], sizes = [2, 222], strides = [1, 1]} : vector<2x256xf32> to vector<2x222xf32>
    %196 = vector.broadcast %1 : f32 to vector<2x222xf32>
    %197 = arith.mulf %196, %195 : vector<2x222xf32>
    %198 = arith.addf %179, %197 : vector<2x222xf32>
    %199 = vector.broadcast %28 : f32 to vector<2x222xf32>
    %200 = arith.mulf %199, %195 : vector<2x222xf32>
    %201 = arith.addf %182, %200 : vector<2x222xf32>
    %202 = vector.broadcast %55 : f32 to vector<2x222xf32>
    %203 = arith.mulf %202, %195 : vector<2x222xf32>
    %204 = arith.addf %185, %203 : vector<2x222xf32>
    %205 = vector.broadcast %82 : f32 to vector<2x222xf32>
    %206 = arith.mulf %205, %195 : vector<2x222xf32>
    %207 = arith.addf %188, %206 : vector<2x222xf32>
    %208 = vector.broadcast %109 : f32 to vector<2x222xf32>
    %209 = arith.mulf %208, %195 : vector<2x222xf32>
    %210 = arith.addf %191, %209 : vector<2x222xf32>
    %211 = vector.broadcast %136 : f32 to vector<2x222xf32>
    %212 = arith.mulf %211, %195 : vector<2x222xf32>
    %213 = arith.addf %194, %212 : vector<2x222xf32>
    %214 = vector.extract_strided_slice %175 {offsets = [0, 2], sizes = [2, 222], strides = [1, 1]} : vector<2x256xf32> to vector<2x222xf32>
    %215 = vector.broadcast %2 : f32 to vector<2x222xf32>
    %216 = arith.mulf %215, %214 : vector<2x222xf32>
    %217 = arith.addf %198, %216 : vector<2x222xf32>
    %218 = vector.broadcast %29 : f32 to vector<2x222xf32>
    %219 = arith.mulf %218, %214 : vector<2x222xf32>
    %220 = arith.addf %201, %219 : vector<2x222xf32>
    %221 = vector.broadcast %56 : f32 to vector<2x222xf32>
    %222 = arith.mulf %221, %214 : vector<2x222xf32>
    %223 = arith.addf %204, %222 : vector<2x222xf32>
    %224 = vector.broadcast %83 : f32 to vector<2x222xf32>
    %225 = arith.mulf %224, %214 : vector<2x222xf32>
    %226 = arith.addf %207, %225 : vector<2x222xf32>
    %227 = vector.broadcast %110 : f32 to vector<2x222xf32>
    %228 = arith.mulf %227, %214 : vector<2x222xf32>
    %229 = arith.addf %210, %228 : vector<2x222xf32>
    %230 = vector.broadcast %137 : f32 to vector<2x222xf32>
    %231 = arith.mulf %230, %214 : vector<2x222xf32>
    %232 = arith.addf %213, %231 : vector<2x222xf32>
    %233 = vector.extract_strided_slice %175 {offsets = [0, 16], sizes = [2, 222], strides = [1, 1]} : vector<2x256xf32> to vector<2x222xf32>
    %234 = vector.broadcast %3 : f32 to vector<2x222xf32>
    %235 = arith.mulf %234, %233 : vector<2x222xf32>
    %236 = arith.addf %217, %235 : vector<2x222xf32>
    %237 = vector.broadcast %30 : f32 to vector<2x222xf32>
    %238 = arith.mulf %237, %233 : vector<2x222xf32>
    %239 = arith.addf %220, %238 : vector<2x222xf32>
    %240 = vector.broadcast %57 : f32 to vector<2x222xf32>
    %241 = arith.mulf %240, %233 : vector<2x222xf32>
    %242 = arith.addf %223, %241 : vector<2x222xf32>
    %243 = vector.broadcast %84 : f32 to vector<2x222xf32>
    %244 = arith.mulf %243, %233 : vector<2x222xf32>
    %245 = arith.addf %226, %244 : vector<2x222xf32>
    %246 = vector.broadcast %111 : f32 to vector<2x222xf32>
    %247 = arith.mulf %246, %233 : vector<2x222xf32>
    %248 = arith.addf %229, %247 : vector<2x222xf32>
    %249 = vector.broadcast %138 : f32 to vector<2x222xf32>
    %250 = arith.mulf %249, %233 : vector<2x222xf32>
    %251 = arith.addf %232, %250 : vector<2x222xf32>
    %252 = vector.extract_strided_slice %175 {offsets = [0, 17], sizes = [2, 222], strides = [1, 1]} : vector<2x256xf32> to vector<2x222xf32>
    %253 = vector.broadcast %4 : f32 to vector<2x222xf32>
    %254 = arith.mulf %253, %252 : vector<2x222xf32>
    %255 = arith.addf %236, %254 : vector<2x222xf32>
    %256 = vector.broadcast %31 : f32 to vector<2x222xf32>
    %257 = arith.mulf %256, %252 : vector<2x222xf32>
    %258 = arith.addf %239, %257 : vector<2x222xf32>
    %259 = vector.broadcast %58 : f32 to vector<2x222xf32>
    %260 = arith.mulf %259, %252 : vector<2x222xf32>
    %261 = arith.addf %242, %260 : vector<2x222xf32>
    %262 = vector.broadcast %85 : f32 to vector<2x222xf32>
    %263 = arith.mulf %262, %252 : vector<2x222xf32>
    %264 = arith.addf %245, %263 : vector<2x222xf32>
    %265 = vector.broadcast %112 : f32 to vector<2x222xf32>
    %266 = arith.mulf %265, %252 : vector<2x222xf32>
    %267 = arith.addf %248, %266 : vector<2x222xf32>
    %268 = vector.broadcast %139 : f32 to vector<2x222xf32>
    %269 = arith.mulf %268, %252 : vector<2x222xf32>
    %270 = arith.addf %251, %269 : vector<2x222xf32>
    %271 = vector.extract_strided_slice %175 {offsets = [0, 18], sizes = [2, 222], strides = [1, 1]} : vector<2x256xf32> to vector<2x222xf32>
    %272 = vector.broadcast %5 : f32 to vector<2x222xf32>
    %273 = arith.mulf %272, %271 : vector<2x222xf32>
    %274 = arith.addf %255, %273 : vector<2x222xf32>
    %275 = vector.broadcast %32 : f32 to vector<2x222xf32>
    %276 = arith.mulf %275, %271 : vector<2x222xf32>
    %277 = arith.addf %258, %276 : vector<2x222xf32>
    %278 = vector.broadcast %59 : f32 to vector<2x222xf32>
    %279 = arith.mulf %278, %271 : vector<2x222xf32>
    %280 = arith.addf %261, %279 : vector<2x222xf32>
    %281 = vector.broadcast %86 : f32 to vector<2x222xf32>
    %282 = arith.mulf %281, %271 : vector<2x222xf32>
    %283 = arith.addf %264, %282 : vector<2x222xf32>
    %284 = vector.broadcast %113 : f32 to vector<2x222xf32>
    %285 = arith.mulf %284, %271 : vector<2x222xf32>
    %286 = arith.addf %267, %285 : vector<2x222xf32>
    %287 = vector.broadcast %140 : f32 to vector<2x222xf32>
    %288 = arith.mulf %287, %271 : vector<2x222xf32>
    %289 = arith.addf %270, %288 : vector<2x222xf32>
    %290 = vector.extract_strided_slice %175 {offsets = [0, 32], sizes = [2, 222], strides = [1, 1]} : vector<2x256xf32> to vector<2x222xf32>
    %291 = vector.broadcast %6 : f32 to vector<2x222xf32>
    %292 = arith.mulf %291, %290 : vector<2x222xf32>
    %293 = arith.addf %274, %292 : vector<2x222xf32>
    %294 = vector.broadcast %33 : f32 to vector<2x222xf32>
    %295 = arith.mulf %294, %290 : vector<2x222xf32>
    %296 = arith.addf %277, %295 : vector<2x222xf32>
    %297 = vector.broadcast %60 : f32 to vector<2x222xf32>
    %298 = arith.mulf %297, %290 : vector<2x222xf32>
    %299 = arith.addf %280, %298 : vector<2x222xf32>
    %300 = vector.broadcast %87 : f32 to vector<2x222xf32>
    %301 = arith.mulf %300, %290 : vector<2x222xf32>
    %302 = arith.addf %283, %301 : vector<2x222xf32>
    %303 = vector.broadcast %114 : f32 to vector<2x222xf32>
    %304 = arith.mulf %303, %290 : vector<2x222xf32>
    %305 = arith.addf %286, %304 : vector<2x222xf32>
    %306 = vector.broadcast %141 : f32 to vector<2x222xf32>
    %307 = arith.mulf %306, %290 : vector<2x222xf32>
    %308 = arith.addf %289, %307 : vector<2x222xf32>
    %309 = vector.extract_strided_slice %175 {offsets = [0, 33], sizes = [2, 222], strides = [1, 1]} : vector<2x256xf32> to vector<2x222xf32>
    %310 = vector.broadcast %7 : f32 to vector<2x222xf32>
    %311 = arith.mulf %310, %309 : vector<2x222xf32>
    %312 = arith.addf %293, %311 : vector<2x222xf32>
    %313 = vector.broadcast %34 : f32 to vector<2x222xf32>
    %314 = arith.mulf %313, %309 : vector<2x222xf32>
    %315 = arith.addf %296, %314 : vector<2x222xf32>
    %316 = vector.broadcast %61 : f32 to vector<2x222xf32>
    %317 = arith.mulf %316, %309 : vector<2x222xf32>
    %318 = arith.addf %299, %317 : vector<2x222xf32>
    %319 = vector.broadcast %88 : f32 to vector<2x222xf32>
    %320 = arith.mulf %319, %309 : vector<2x222xf32>
    %321 = arith.addf %302, %320 : vector<2x222xf32>
    %322 = vector.broadcast %115 : f32 to vector<2x222xf32>
    %323 = arith.mulf %322, %309 : vector<2x222xf32>
    %324 = arith.addf %305, %323 : vector<2x222xf32>
    %325 = vector.broadcast %142 : f32 to vector<2x222xf32>
    %326 = arith.mulf %325, %309 : vector<2x222xf32>
    %327 = arith.addf %308, %326 : vector<2x222xf32>
    %328 = vector.extract_strided_slice %175 {offsets = [0, 34], sizes = [2, 222], strides = [1, 1]} : vector<2x256xf32> to vector<2x222xf32>
    %329 = vector.broadcast %8 : f32 to vector<2x222xf32>
    %330 = arith.mulf %329, %328 : vector<2x222xf32>
    %331 = arith.addf %312, %330 : vector<2x222xf32>
    %332 = vector.broadcast %35 : f32 to vector<2x222xf32>
    %333 = arith.mulf %332, %328 : vector<2x222xf32>
    %334 = arith.addf %315, %333 : vector<2x222xf32>
    %335 = vector.broadcast %62 : f32 to vector<2x222xf32>
    %336 = arith.mulf %335, %328 : vector<2x222xf32>
    %337 = arith.addf %318, %336 : vector<2x222xf32>
    %338 = vector.broadcast %89 : f32 to vector<2x222xf32>
    %339 = arith.mulf %338, %328 : vector<2x222xf32>
    %340 = arith.addf %321, %339 : vector<2x222xf32>
    %341 = vector.broadcast %116 : f32 to vector<2x222xf32>
    %342 = arith.mulf %341, %328 : vector<2x222xf32>
    %343 = arith.addf %324, %342 : vector<2x222xf32>
    %344 = vector.broadcast %143 : f32 to vector<2x222xf32>
    %345 = arith.mulf %344, %328 : vector<2x222xf32>
    %346 = arith.addf %327, %345 : vector<2x222xf32>
    %c1_14 = arith.constant 1 : index
    %c0_15 = arith.constant 0 : index
    %c0_16 = arith.constant 0 : index
    %347 = vector.load %arg1[%c1_14, %c0_15, %c0_16] : memref<3x2x256xf32, #tpu.memory_space<vmem>>, vector<1x2x256xf32>
    %348 = vector.shape_cast %347 : vector<1x2x256xf32> to vector<2x256xf32>
    %349 = vector.extract_strided_slice %348 {offsets = [0, 0], sizes = [2, 222], strides = [1, 1]} : vector<2x256xf32> to vector<2x222xf32>
    %350 = vector.broadcast %9 : f32 to vector<2x222xf32>
    %351 = arith.mulf %350, %349 : vector<2x222xf32>
    %352 = arith.addf %331, %351 : vector<2x222xf32>
    %353 = vector.broadcast %36 : f32 to vector<2x222xf32>
    %354 = arith.mulf %353, %349 : vector<2x222xf32>
    %355 = arith.addf %334, %354 : vector<2x222xf32>
    %356 = vector.broadcast %63 : f32 to vector<2x222xf32>
    %357 = arith.mulf %356, %349 : vector<2x222xf32>
    %358 = arith.addf %337, %357 : vector<2x222xf32>
    %359 = vector.broadcast %90 : f32 to vector<2x222xf32>
    %360 = arith.mulf %359, %349 : vector<2x222xf32>
    %361 = arith.addf %340, %360 : vector<2x222xf32>
    %362 = vector.broadcast %117 : f32 to vector<2x222xf32>
    %363 = arith.mulf %362, %349 : vector<2x222xf32>
    %364 = arith.addf %343, %363 : vector<2x222xf32>
    %365 = vector.broadcast %144 : f32 to vector<2x222xf32>
    %366 = arith.mulf %365, %349 : vector<2x222xf32>
    %367 = arith.addf %346, %366 : vector<2x222xf32>
    %368 = vector.extract_strided_slice %348 {offsets = [0, 1], sizes = [2, 222], strides = [1, 1]} : vector<2x256xf32> to vector<2x222xf32>
    %369 = vector.broadcast %10 : f32 to vector<2x222xf32>
    %370 = arith.mulf %369, %368 : vector<2x222xf32>
    %371 = arith.addf %352, %370 : vector<2x222xf32>
    %372 = vector.broadcast %37 : f32 to vector<2x222xf32>
    %373 = arith.mulf %372, %368 : vector<2x222xf32>
    %374 = arith.addf %355, %373 : vector<2x222xf32>
    %375 = vector.broadcast %64 : f32 to vector<2x222xf32>
    %376 = arith.mulf %375, %368 : vector<2x222xf32>
    %377 = arith.addf %358, %376 : vector<2x222xf32>
    %378 = vector.broadcast %91 : f32 to vector<2x222xf32>
    %379 = arith.mulf %378, %368 : vector<2x222xf32>
    %380 = arith.addf %361, %379 : vector<2x222xf32>
    %381 = vector.broadcast %118 : f32 to vector<2x222xf32>
    %382 = arith.mulf %381, %368 : vector<2x222xf32>
    %383 = arith.addf %364, %382 : vector<2x222xf32>
    %384 = vector.broadcast %145 : f32 to vector<2x222xf32>
    %385 = arith.mulf %384, %368 : vector<2x222xf32>
    %386 = arith.addf %367, %385 : vector<2x222xf32>
    %387 = vector.extract_strided_slice %348 {offsets = [0, 2], sizes = [2, 222], strides = [1, 1]} : vector<2x256xf32> to vector<2x222xf32>
    %388 = vector.broadcast %11 : f32 to vector<2x222xf32>
    %389 = arith.mulf %388, %387 : vector<2x222xf32>
    %390 = arith.addf %371, %389 : vector<2x222xf32>
    %391 = vector.broadcast %38 : f32 to vector<2x222xf32>
    %392 = arith.mulf %391, %387 : vector<2x222xf32>
    %393 = arith.addf %374, %392 : vector<2x222xf32>
    %394 = vector.broadcast %65 : f32 to vector<2x222xf32>
    %395 = arith.mulf %394, %387 : vector<2x222xf32>
    %396 = arith.addf %377, %395 : vector<2x222xf32>
    %397 = vector.broadcast %92 : f32 to vector<2x222xf32>
    %398 = arith.mulf %397, %387 : vector<2x222xf32>
    %399 = arith.addf %380, %398 : vector<2x222xf32>
    %400 = vector.broadcast %119 : f32 to vector<2x222xf32>
    %401 = arith.mulf %400, %387 : vector<2x222xf32>
    %402 = arith.addf %383, %401 : vector<2x222xf32>
    %403 = vector.broadcast %146 : f32 to vector<2x222xf32>
    %404 = arith.mulf %403, %387 : vector<2x222xf32>
    %405 = arith.addf %386, %404 : vector<2x222xf32>
    %406 = vector.extract_strided_slice %348 {offsets = [0, 16], sizes = [2, 222], strides = [1, 1]} : vector<2x256xf32> to vector<2x222xf32>
    %407 = vector.broadcast %12 : f32 to vector<2x222xf32>
    %408 = arith.mulf %407, %406 : vector<2x222xf32>
    %409 = arith.addf %390, %408 : vector<2x222xf32>
    %410 = vector.broadcast %39 : f32 to vector<2x222xf32>
    %411 = arith.mulf %410, %406 : vector<2x222xf32>
    %412 = arith.addf %393, %411 : vector<2x222xf32>
    %413 = vector.broadcast %66 : f32 to vector<2x222xf32>
    %414 = arith.mulf %413, %406 : vector<2x222xf32>
    %415 = arith.addf %396, %414 : vector<2x222xf32>
    %416 = vector.broadcast %93 : f32 to vector<2x222xf32>
    %417 = arith.mulf %416, %406 : vector<2x222xf32>
    %418 = arith.addf %399, %417 : vector<2x222xf32>
    %419 = vector.broadcast %120 : f32 to vector<2x222xf32>
    %420 = arith.mulf %419, %406 : vector<2x222xf32>
    %421 = arith.addf %402, %420 : vector<2x222xf32>
    %422 = vector.broadcast %147 : f32 to vector<2x222xf32>
    %423 = arith.mulf %422, %406 : vector<2x222xf32>
    %424 = arith.addf %405, %423 : vector<2x222xf32>
    %425 = vector.extract_strided_slice %348 {offsets = [0, 17], sizes = [2, 222], strides = [1, 1]} : vector<2x256xf32> to vector<2x222xf32>
    %426 = vector.broadcast %13 : f32 to vector<2x222xf32>
    %427 = arith.mulf %426, %425 : vector<2x222xf32>
    %428 = arith.addf %409, %427 : vector<2x222xf32>
    %429 = vector.broadcast %40 : f32 to vector<2x222xf32>
    %430 = arith.mulf %429, %425 : vector<2x222xf32>
    %431 = arith.addf %412, %430 : vector<2x222xf32>
    %432 = vector.broadcast %67 : f32 to vector<2x222xf32>
    %433 = arith.mulf %432, %425 : vector<2x222xf32>
    %434 = arith.addf %415, %433 : vector<2x222xf32>
    %435 = vector.broadcast %94 : f32 to vector<2x222xf32>
    %436 = arith.mulf %435, %425 : vector<2x222xf32>
    %437 = arith.addf %418, %436 : vector<2x222xf32>
    %438 = vector.broadcast %121 : f32 to vector<2x222xf32>
    %439 = arith.mulf %438, %425 : vector<2x222xf32>
    %440 = arith.addf %421, %439 : vector<2x222xf32>
    %441 = vector.broadcast %148 : f32 to vector<2x222xf32>
    %442 = arith.mulf %441, %425 : vector<2x222xf32>
    %443 = arith.addf %424, %442 : vector<2x222xf32>
    %444 = vector.extract_strided_slice %348 {offsets = [0, 18], sizes = [2, 222], strides = [1, 1]} : vector<2x256xf32> to vector<2x222xf32>
    %445 = vector.broadcast %14 : f32 to vector<2x222xf32>
    %446 = arith.mulf %445, %444 : vector<2x222xf32>
    %447 = arith.addf %428, %446 : vector<2x222xf32>
    %448 = vector.broadcast %41 : f32 to vector<2x222xf32>
    %449 = arith.mulf %448, %444 : vector<2x222xf32>
    %450 = arith.addf %431, %449 : vector<2x222xf32>
    %451 = vector.broadcast %68 : f32 to vector<2x222xf32>
    %452 = arith.mulf %451, %444 : vector<2x222xf32>
    %453 = arith.addf %434, %452 : vector<2x222xf32>
    %454 = vector.broadcast %95 : f32 to vector<2x222xf32>
    %455 = arith.mulf %454, %444 : vector<2x222xf32>
    %456 = arith.addf %437, %455 : vector<2x222xf32>
    %457 = vector.broadcast %122 : f32 to vector<2x222xf32>
    %458 = arith.mulf %457, %444 : vector<2x222xf32>
    %459 = arith.addf %440, %458 : vector<2x222xf32>
    %460 = vector.broadcast %149 : f32 to vector<2x222xf32>
    %461 = arith.mulf %460, %444 : vector<2x222xf32>
    %462 = arith.addf %443, %461 : vector<2x222xf32>
    %463 = vector.extract_strided_slice %348 {offsets = [0, 32], sizes = [2, 222], strides = [1, 1]} : vector<2x256xf32> to vector<2x222xf32>
    %464 = vector.broadcast %15 : f32 to vector<2x222xf32>
    %465 = arith.mulf %464, %463 : vector<2x222xf32>
    %466 = arith.addf %447, %465 : vector<2x222xf32>
    %467 = vector.broadcast %42 : f32 to vector<2x222xf32>
    %468 = arith.mulf %467, %463 : vector<2x222xf32>
    %469 = arith.addf %450, %468 : vector<2x222xf32>
    %470 = vector.broadcast %69 : f32 to vector<2x222xf32>
    %471 = arith.mulf %470, %463 : vector<2x222xf32>
    %472 = arith.addf %453, %471 : vector<2x222xf32>
    %473 = vector.broadcast %96 : f32 to vector<2x222xf32>
    %474 = arith.mulf %473, %463 : vector<2x222xf32>
    %475 = arith.addf %456, %474 : vector<2x222xf32>
    %476 = vector.broadcast %123 : f32 to vector<2x222xf32>
    %477 = arith.mulf %476, %463 : vector<2x222xf32>
    %478 = arith.addf %459, %477 : vector<2x222xf32>
    %479 = vector.broadcast %150 : f32 to vector<2x222xf32>
    %480 = arith.mulf %479, %463 : vector<2x222xf32>
    %481 = arith.addf %462, %480 : vector<2x222xf32>
    %482 = vector.extract_strided_slice %348 {offsets = [0, 33], sizes = [2, 222], strides = [1, 1]} : vector<2x256xf32> to vector<2x222xf32>
    %483 = vector.broadcast %16 : f32 to vector<2x222xf32>
    %484 = arith.mulf %483, %482 : vector<2x222xf32>
    %485 = arith.addf %466, %484 : vector<2x222xf32>
    %486 = vector.broadcast %43 : f32 to vector<2x222xf32>
    %487 = arith.mulf %486, %482 : vector<2x222xf32>
    %488 = arith.addf %469, %487 : vector<2x222xf32>
    %489 = vector.broadcast %70 : f32 to vector<2x222xf32>
    %490 = arith.mulf %489, %482 : vector<2x222xf32>
    %491 = arith.addf %472, %490 : vector<2x222xf32>
    %492 = vector.broadcast %97 : f32 to vector<2x222xf32>
    %493 = arith.mulf %492, %482 : vector<2x222xf32>
    %494 = arith.addf %475, %493 : vector<2x222xf32>
    %495 = vector.broadcast %124 : f32 to vector<2x222xf32>
    %496 = arith.mulf %495, %482 : vector<2x222xf32>
    %497 = arith.addf %478, %496 : vector<2x222xf32>
    %498 = vector.broadcast %151 : f32 to vector<2x222xf32>
    %499 = arith.mulf %498, %482 : vector<2x222xf32>
    %500 = arith.addf %481, %499 : vector<2x222xf32>
    %501 = vector.extract_strided_slice %348 {offsets = [0, 34], sizes = [2, 222], strides = [1, 1]} : vector<2x256xf32> to vector<2x222xf32>
    %502 = vector.broadcast %17 : f32 to vector<2x222xf32>
    %503 = arith.mulf %502, %501 : vector<2x222xf32>
    %504 = arith.addf %485, %503 : vector<2x222xf32>
    %505 = vector.broadcast %44 : f32 to vector<2x222xf32>
    %506 = arith.mulf %505, %501 : vector<2x222xf32>
    %507 = arith.addf %488, %506 : vector<2x222xf32>
    %508 = vector.broadcast %71 : f32 to vector<2x222xf32>
    %509 = arith.mulf %508, %501 : vector<2x222xf32>
    %510 = arith.addf %491, %509 : vector<2x222xf32>
    %511 = vector.broadcast %98 : f32 to vector<2x222xf32>
    %512 = arith.mulf %511, %501 : vector<2x222xf32>
    %513 = arith.addf %494, %512 : vector<2x222xf32>
    %514 = vector.broadcast %125 : f32 to vector<2x222xf32>
    %515 = arith.mulf %514, %501 : vector<2x222xf32>
    %516 = arith.addf %497, %515 : vector<2x222xf32>
    %517 = vector.broadcast %152 : f32 to vector<2x222xf32>
    %518 = arith.mulf %517, %501 : vector<2x222xf32>
    %519 = arith.addf %500, %518 : vector<2x222xf32>
    %c2_17 = arith.constant 2 : index
    %c0_18 = arith.constant 0 : index
    %c0_19 = arith.constant 0 : index
    %520 = vector.load %arg1[%c2_17, %c0_18, %c0_19] : memref<3x2x256xf32, #tpu.memory_space<vmem>>, vector<1x2x256xf32>
    %521 = vector.shape_cast %520 : vector<1x2x256xf32> to vector<2x256xf32>
    %522 = vector.extract_strided_slice %521 {offsets = [0, 0], sizes = [2, 222], strides = [1, 1]} : vector<2x256xf32> to vector<2x222xf32>
    %523 = vector.broadcast %18 : f32 to vector<2x222xf32>
    %524 = arith.mulf %523, %522 : vector<2x222xf32>
    %525 = arith.addf %504, %524 : vector<2x222xf32>
    %526 = vector.broadcast %45 : f32 to vector<2x222xf32>
    %527 = arith.mulf %526, %522 : vector<2x222xf32>
    %528 = arith.addf %507, %527 : vector<2x222xf32>
    %529 = vector.broadcast %72 : f32 to vector<2x222xf32>
    %530 = arith.mulf %529, %522 : vector<2x222xf32>
    %531 = arith.addf %510, %530 : vector<2x222xf32>
    %532 = vector.broadcast %99 : f32 to vector<2x222xf32>
    %533 = arith.mulf %532, %522 : vector<2x222xf32>
    %534 = arith.addf %513, %533 : vector<2x222xf32>
    %535 = vector.broadcast %126 : f32 to vector<2x222xf32>
    %536 = arith.mulf %535, %522 : vector<2x222xf32>
    %537 = arith.addf %516, %536 : vector<2x222xf32>
    %538 = vector.broadcast %153 : f32 to vector<2x222xf32>
    %539 = arith.mulf %538, %522 : vector<2x222xf32>
    %540 = arith.addf %519, %539 : vector<2x222xf32>
    %541 = vector.extract_strided_slice %521 {offsets = [0, 1], sizes = [2, 222], strides = [1, 1]} : vector<2x256xf32> to vector<2x222xf32>
    %542 = vector.broadcast %19 : f32 to vector<2x222xf32>
    %543 = arith.mulf %542, %541 : vector<2x222xf32>
    %544 = arith.addf %525, %543 : vector<2x222xf32>
    %545 = vector.broadcast %46 : f32 to vector<2x222xf32>
    %546 = arith.mulf %545, %541 : vector<2x222xf32>
    %547 = arith.addf %528, %546 : vector<2x222xf32>
    %548 = vector.broadcast %73 : f32 to vector<2x222xf32>
    %549 = arith.mulf %548, %541 : vector<2x222xf32>
    %550 = arith.addf %531, %549 : vector<2x222xf32>
    %551 = vector.broadcast %100 : f32 to vector<2x222xf32>
    %552 = arith.mulf %551, %541 : vector<2x222xf32>
    %553 = arith.addf %534, %552 : vector<2x222xf32>
    %554 = vector.broadcast %127 : f32 to vector<2x222xf32>
    %555 = arith.mulf %554, %541 : vector<2x222xf32>
    %556 = arith.addf %537, %555 : vector<2x222xf32>
    %557 = vector.broadcast %154 : f32 to vector<2x222xf32>
    %558 = arith.mulf %557, %541 : vector<2x222xf32>
    %559 = arith.addf %540, %558 : vector<2x222xf32>
    %560 = vector.extract_strided_slice %521 {offsets = [0, 2], sizes = [2, 222], strides = [1, 1]} : vector<2x256xf32> to vector<2x222xf32>
    %561 = vector.broadcast %20 : f32 to vector<2x222xf32>
    %562 = arith.mulf %561, %560 : vector<2x222xf32>
    %563 = arith.addf %544, %562 : vector<2x222xf32>
    %564 = vector.broadcast %47 : f32 to vector<2x222xf32>
    %565 = arith.mulf %564, %560 : vector<2x222xf32>
    %566 = arith.addf %547, %565 : vector<2x222xf32>
    %567 = vector.broadcast %74 : f32 to vector<2x222xf32>
    %568 = arith.mulf %567, %560 : vector<2x222xf32>
    %569 = arith.addf %550, %568 : vector<2x222xf32>
    %570 = vector.broadcast %101 : f32 to vector<2x222xf32>
    %571 = arith.mulf %570, %560 : vector<2x222xf32>
    %572 = arith.addf %553, %571 : vector<2x222xf32>
    %573 = vector.broadcast %128 : f32 to vector<2x222xf32>
    %574 = arith.mulf %573, %560 : vector<2x222xf32>
    %575 = arith.addf %556, %574 : vector<2x222xf32>
    %576 = vector.broadcast %155 : f32 to vector<2x222xf32>
    %577 = arith.mulf %576, %560 : vector<2x222xf32>
    %578 = arith.addf %559, %577 : vector<2x222xf32>
    %579 = vector.extract_strided_slice %521 {offsets = [0, 16], sizes = [2, 222], strides = [1, 1]} : vector<2x256xf32> to vector<2x222xf32>
    %580 = vector.broadcast %21 : f32 to vector<2x222xf32>
    %581 = arith.mulf %580, %579 : vector<2x222xf32>
    %582 = arith.addf %563, %581 : vector<2x222xf32>
    %583 = vector.broadcast %48 : f32 to vector<2x222xf32>
    %584 = arith.mulf %583, %579 : vector<2x222xf32>
    %585 = arith.addf %566, %584 : vector<2x222xf32>
    %586 = vector.broadcast %75 : f32 to vector<2x222xf32>
    %587 = arith.mulf %586, %579 : vector<2x222xf32>
    %588 = arith.addf %569, %587 : vector<2x222xf32>
    %589 = vector.broadcast %102 : f32 to vector<2x222xf32>
    %590 = arith.mulf %589, %579 : vector<2x222xf32>
    %591 = arith.addf %572, %590 : vector<2x222xf32>
    %592 = vector.broadcast %129 : f32 to vector<2x222xf32>
    %593 = arith.mulf %592, %579 : vector<2x222xf32>
    %594 = arith.addf %575, %593 : vector<2x222xf32>
    %595 = vector.broadcast %156 : f32 to vector<2x222xf32>
    %596 = arith.mulf %595, %579 : vector<2x222xf32>
    %597 = arith.addf %578, %596 : vector<2x222xf32>
    %598 = vector.extract_strided_slice %521 {offsets = [0, 17], sizes = [2, 222], strides = [1, 1]} : vector<2x256xf32> to vector<2x222xf32>
    %599 = vector.broadcast %22 : f32 to vector<2x222xf32>
    %600 = arith.mulf %599, %598 : vector<2x222xf32>
    %601 = arith.addf %582, %600 : vector<2x222xf32>
    %602 = vector.broadcast %49 : f32 to vector<2x222xf32>
    %603 = arith.mulf %602, %598 : vector<2x222xf32>
    %604 = arith.addf %585, %603 : vector<2x222xf32>
    %605 = vector.broadcast %76 : f32 to vector<2x222xf32>
    %606 = arith.mulf %605, %598 : vector<2x222xf32>
    %607 = arith.addf %588, %606 : vector<2x222xf32>
    %608 = vector.broadcast %103 : f32 to vector<2x222xf32>
    %609 = arith.mulf %608, %598 : vector<2x222xf32>
    %610 = arith.addf %591, %609 : vector<2x222xf32>
    %611 = vector.broadcast %130 : f32 to vector<2x222xf32>
    %612 = arith.mulf %611, %598 : vector<2x222xf32>
    %613 = arith.addf %594, %612 : vector<2x222xf32>
    %614 = vector.broadcast %157 : f32 to vector<2x222xf32>
    %615 = arith.mulf %614, %598 : vector<2x222xf32>
    %616 = arith.addf %597, %615 : vector<2x222xf32>
    %617 = vector.extract_strided_slice %521 {offsets = [0, 18], sizes = [2, 222], strides = [1, 1]} : vector<2x256xf32> to vector<2x222xf32>
    %618 = vector.broadcast %23 : f32 to vector<2x222xf32>
    %619 = arith.mulf %618, %617 : vector<2x222xf32>
    %620 = arith.addf %601, %619 : vector<2x222xf32>
    %621 = vector.broadcast %50 : f32 to vector<2x222xf32>
    %622 = arith.mulf %621, %617 : vector<2x222xf32>
    %623 = arith.addf %604, %622 : vector<2x222xf32>
    %624 = vector.broadcast %77 : f32 to vector<2x222xf32>
    %625 = arith.mulf %624, %617 : vector<2x222xf32>
    %626 = arith.addf %607, %625 : vector<2x222xf32>
    %627 = vector.broadcast %104 : f32 to vector<2x222xf32>
    %628 = arith.mulf %627, %617 : vector<2x222xf32>
    %629 = arith.addf %610, %628 : vector<2x222xf32>
    %630 = vector.broadcast %131 : f32 to vector<2x222xf32>
    %631 = arith.mulf %630, %617 : vector<2x222xf32>
    %632 = arith.addf %613, %631 : vector<2x222xf32>
    %633 = vector.broadcast %158 : f32 to vector<2x222xf32>
    %634 = arith.mulf %633, %617 : vector<2x222xf32>
    %635 = arith.addf %616, %634 : vector<2x222xf32>
    %636 = vector.extract_strided_slice %521 {offsets = [0, 32], sizes = [2, 222], strides = [1, 1]} : vector<2x256xf32> to vector<2x222xf32>
    %637 = vector.broadcast %24 : f32 to vector<2x222xf32>
    %638 = arith.mulf %637, %636 : vector<2x222xf32>
    %639 = arith.addf %620, %638 : vector<2x222xf32>
    %640 = vector.broadcast %51 : f32 to vector<2x222xf32>
    %641 = arith.mulf %640, %636 : vector<2x222xf32>
    %642 = arith.addf %623, %641 : vector<2x222xf32>
    %643 = vector.broadcast %78 : f32 to vector<2x222xf32>
    %644 = arith.mulf %643, %636 : vector<2x222xf32>
    %645 = arith.addf %626, %644 : vector<2x222xf32>
    %646 = vector.broadcast %105 : f32 to vector<2x222xf32>
    %647 = arith.mulf %646, %636 : vector<2x222xf32>
    %648 = arith.addf %629, %647 : vector<2x222xf32>
    %649 = vector.broadcast %132 : f32 to vector<2x222xf32>
    %650 = arith.mulf %649, %636 : vector<2x222xf32>
    %651 = arith.addf %632, %650 : vector<2x222xf32>
    %652 = vector.broadcast %159 : f32 to vector<2x222xf32>
    %653 = arith.mulf %652, %636 : vector<2x222xf32>
    %654 = arith.addf %635, %653 : vector<2x222xf32>
    %655 = vector.extract_strided_slice %521 {offsets = [0, 33], sizes = [2, 222], strides = [1, 1]} : vector<2x256xf32> to vector<2x222xf32>
    %656 = vector.broadcast %25 : f32 to vector<2x222xf32>
    %657 = arith.mulf %656, %655 : vector<2x222xf32>
    %658 = arith.addf %639, %657 : vector<2x222xf32>
    %659 = vector.broadcast %52 : f32 to vector<2x222xf32>
    %660 = arith.mulf %659, %655 : vector<2x222xf32>
    %661 = arith.addf %642, %660 : vector<2x222xf32>
    %662 = vector.broadcast %79 : f32 to vector<2x222xf32>
    %663 = arith.mulf %662, %655 : vector<2x222xf32>
    %664 = arith.addf %645, %663 : vector<2x222xf32>
    %665 = vector.broadcast %106 : f32 to vector<2x222xf32>
    %666 = arith.mulf %665, %655 : vector<2x222xf32>
    %667 = arith.addf %648, %666 : vector<2x222xf32>
    %668 = vector.broadcast %133 : f32 to vector<2x222xf32>
    %669 = arith.mulf %668, %655 : vector<2x222xf32>
    %670 = arith.addf %651, %669 : vector<2x222xf32>
    %671 = vector.broadcast %160 : f32 to vector<2x222xf32>
    %672 = arith.mulf %671, %655 : vector<2x222xf32>
    %673 = arith.addf %654, %672 : vector<2x222xf32>
    %674 = vector.extract_strided_slice %521 {offsets = [0, 34], sizes = [2, 222], strides = [1, 1]} : vector<2x256xf32> to vector<2x222xf32>
    %675 = vector.broadcast %26 : f32 to vector<2x222xf32>
    %676 = arith.mulf %675, %674 : vector<2x222xf32>
    %677 = arith.addf %658, %676 : vector<2x222xf32>
    %678 = vector.broadcast %53 : f32 to vector<2x222xf32>
    %679 = arith.mulf %678, %674 : vector<2x222xf32>
    %680 = arith.addf %661, %679 : vector<2x222xf32>
    %681 = vector.broadcast %80 : f32 to vector<2x222xf32>
    %682 = arith.mulf %681, %674 : vector<2x222xf32>
    %683 = arith.addf %664, %682 : vector<2x222xf32>
    %684 = vector.broadcast %107 : f32 to vector<2x222xf32>
    %685 = arith.mulf %684, %674 : vector<2x222xf32>
    %686 = arith.addf %667, %685 : vector<2x222xf32>
    %687 = vector.broadcast %134 : f32 to vector<2x222xf32>
    %688 = arith.mulf %687, %674 : vector<2x222xf32>
    %689 = arith.addf %670, %688 : vector<2x222xf32>
    %690 = vector.broadcast %161 : f32 to vector<2x222xf32>
    %691 = arith.mulf %690, %674 : vector<2x222xf32>
    %692 = arith.addf %673, %691 : vector<2x222xf32>
    %693 = vector.broadcast %162 : f32 to vector<2x222xf32>
    %694 = arith.addf %677, %693 : vector<2x222xf32>
    %c0_20 = arith.constant 0 : index
    %c0_21 = arith.constant 0 : index
    %c0_22 = arith.constant 0 : index
    %695 = vector.load %arg4[%c0_20, %c0_21, %c0_22] : memref<6x2x222xf32, #tpu.memory_space<vmem>>, vector<1x2x222xf32>
    %696 = vector.shape_cast %695 : vector<1x2x222xf32> to vector<2x222xf32>
    %697 = vector.shape_cast %694 : vector<2x222xf32> to vector<1x2x222xf32>
    tpu.vector_store %arg4[%c0_20, %c0_21, %c0_22], %697 {strides = array<i32>} : memref<6x2x222xf32, #tpu.memory_space<vmem>>, vector<1x2x222xf32>,
    %698 = vector.broadcast %163 : f32 to vector<2x222xf32>
    %699 = arith.addf %680, %698 : vector<2x222xf32>
    %c1_23 = arith.constant 1 : index
    %c0_24 = arith.constant 0 : index
    %c0_25 = arith.constant 0 : index
    %700 = vector.load %arg4[%c1_23, %c0_24, %c0_25] : memref<6x2x222xf32, #tpu.memory_space<vmem>>, vector<1x2x222xf32>
    %701 = vector.shape_cast %700 : vector<1x2x222xf32> to vector<2x222xf32>
    %702 = vector.shape_cast %699 : vector<2x222xf32> to vector<1x2x222xf32>
    tpu.vector_store %arg4[%c1_23, %c0_24, %c0_25], %702 {strides = array<i32>} : memref<6x2x222xf32, #tpu.memory_space<vmem>>, vector<1x2x222xf32>,
    %703 = vector.broadcast %164 : f32 to vector<2x222xf32>
    %704 = arith.addf %683, %703 : vector<2x222xf32>
    %c2_26 = arith.constant 2 : index
    %c0_27 = arith.constant 0 : index
    %c0_28 = arith.constant 0 : index
    %705 = vector.load %arg4[%c2_26, %c0_27, %c0_28] : memref<6x2x222xf32, #tpu.memory_space<vmem>>, vector<1x2x222xf32>
    %706 = vector.shape_cast %705 : vector<1x2x222xf32> to vector<2x222xf32>
    %707 = vector.shape_cast %704 : vector<2x222xf32> to vector<1x2x222xf32>
    tpu.vector_store %arg4[%c2_26, %c0_27, %c0_28], %707 {strides = array<i32>} : memref<6x2x222xf32, #tpu.memory_space<vmem>>, vector<1x2x222xf32>,
    %708 = vector.broadcast %165 : f32 to vector<2x222xf32>
    %709 = arith.addf %686, %708 : vector<2x222xf32>
    %c3_29 = arith.constant 3 : index
    %c0_30 = arith.constant 0 : index
    %c0_31 = arith.constant 0 : index
    %710 = vector.load %arg4[%c3_29, %c0_30, %c0_31] : memref<6x2x222xf32, #tpu.memory_space<vmem>>, vector<1x2x222xf32>
    %711 = vector.shape_cast %710 : vector<1x2x222xf32> to vector<2x222xf32>
    %712 = vector.shape_cast %709 : vector<2x222xf32> to vector<1x2x222xf32>
    tpu.vector_store %arg4[%c3_29, %c0_30, %c0_31], %712 {strides = array<i32>} : memref<6x2x222xf32, #tpu.memory_space<vmem>>, vector<1x2x222xf32>,
    %713 = vector.broadcast %166 : f32 to vector<2x222xf32>
    %714 = arith.addf %689, %713 : vector<2x222xf32>
    %c4_32 = arith.constant 4 : index
    %c0_33 = arith.constant 0 : index
    %c0_34 = arith.constant 0 : index
    %715 = vector.load %arg4[%c4_32, %c0_33, %c0_34] : memref<6x2x222xf32, #tpu.memory_space<vmem>>, vector<1x2x222xf32>
    %716 = vector.shape_cast %715 : vector<1x2x222xf32> to vector<2x222xf32>
    %717 = vector.shape_cast %714 : vector<2x222xf32> to vector<1x2x222xf32>
    tpu.vector_store %arg4[%c4_32, %c0_33, %c0_34], %717 {strides = array<i32>} : memref<6x2x222xf32, #tpu.memory_space<vmem>>, vector<1x2x222xf32>,
    %718 = vector.broadcast %167 : f32 to vector<2x222xf32>
    %719 = arith.addf %692, %718 : vector<2x222xf32>
    %c5_35 = arith.constant 5 : index
    %c0_36 = arith.constant 0 : index
    %c0_37 = arith.constant 0 : index
    %720 = vector.load %arg4[%c5_35, %c0_36, %c0_37] : memref<6x2x222xf32, #tpu.memory_space<vmem>>, vector<1x2x222xf32>
    %721 = vector.shape_cast %720 : vector<1x2x222xf32> to vector<2x222xf32>
    %722 = vector.shape_cast %719 : vector<2x222xf32> to vector<1x2x222xf32>
    tpu.vector_store %arg4[%c5_35, %c0_36, %c0_37], %722 {strides = array<i32>} : memref<6x2x222xf32, #tpu.memory_space<vmem>>, vector<1x2x222xf32>,
    return
  }
  func.func @transform_0(%arg0: i32) -> (i32, i32, i32) {
    %c0_i32 = arith.constant 0 : i32
    %c0_i32_0 = arith.constant 0 : i32
    %c0_i32_1 = arith.constant 0 : i32
    return %c0_i32, %arg0, %c0_i32_0 : i32, i32, i32
  }
  func.func @transform_1(%arg0: i32) -> i32 {
    %c0_i32 = arith.constant 0 : i32
    %c0_i32_0 = arith.constant 0 : i32
    return %c0_i32 : i32
  }
  func.func @transform_2(%arg0: i32) -> i32 {
    %c0_i32 = arith.constant 0 : i32
    %c0_i32_0 = arith.constant 0 : i32
    return %c0_i32 : i32
  }
  func.func @transform_3(%arg0: i32) -> (i32, i32, i32) {
    %c0_i32 = arith.constant 0 : i32
    %c0_i32_0 = arith.constant 0 : i32
    %c0_i32_1 = arith.constant 0 : i32
    return %c0_i32, %arg0, %c0_i32_0 : i32, i32, i32
  }
}

</mosaic_0001>

<bundles_post_ra>
// kernel: tpu_custom_call.1
= control target key start
LH: loop header
LB: loop body
LE: loop exit
PB: predicated region body
PF: predicated region fallthrough
CT: control target
= control target key end

     0   :  { %8 = vsyncpa [#allocation3], 0  ;;  %s3046_s0 = inlined_call_operand.hbm [shape: f32[3,2,256], index: 0, kind: input, shape index: {}]   ;;  %s3047_s1 = inlined_call_operand.vmem [shape: f32[162], index: 1, kind: input, shape index: {}]   ;;  %s3048_s2 = inlined_call_operand.vmem [shape: f32[6], index: 2, kind: input, shape index: {}]   ;;  %s3049_s3 = inlined_call_operand.hbm [shape: f32[6,2,222], index: 3, kind: output, shape index: {}]  }
   0x1   :  { %9 = vsyncpa [#allocation5], 0 }
   0x2   :  { %10 = vsyncpa [#allocation8], 0 }
   0x3   :  { %11 = vsyncpa [#allocation4], 0  ;;  %s1887_s12 = smov [#allocation2]   ;;  %s30_s16 = sshll.u32 %s3047_s1, 4  ;;  %s31_s16 = int_to_ptr.vmem [resolvable:$true] %s30_s16 }
   0x4   :  { %s17_s13 = sshll.u32 %s1887_s12, 4  ;;  %s1811_s19 = scalar_lea.hbm %s3046_s0, 192  ;;  %s18_s13 = int_to_ptr.vmem [resolvable:$true] %s17_s13 }
   0x5   :  { %p1812_p0 = scmp.ne.s32.totalorder %s3046_s0, %s1811_s19  ;;  %p1815_p1 = scmp.lt.u32.totalorder %s1811_s19, %s3046_s0 }
   0x7   :  { %p1817_p2 = pnand %p1815_p1, %p1812_p0 }
   0x9   :  { %1820 = shalt.err (!%p1817_p2)
}
   0xa   :  { %s1821_s24 = scalar_lea.vmem %s18_s13, 192  ;;  %p1826_p4 = scmp.lt.s32.totalorder %s18_s13, %s18_s13 }
   0xb   :  { %p1822_p3 = scmp.ne.s32.totalorder %s18_s13, %s1821_s24  ;;  %p1827_p5 = scmp.lt.s32.totalorder %s1821_s24, %s1821_s24 }
   0xd   :  { %p1828_p6 = por %p1827_p5, %p1826_p4 }
   0xf   :  { %p1829_p7 = pnand %p1828_p6, %p1822_p3 }
  0x11   :  { %1832 = shalt.err (!%p1829_p7)
}
  0x12   :  { %s3050_s1 = smov 64   ;;  %s3051_s25 = smov 4  }
  0x13   :  { %23 = dma.hbm_to_vmem [thread:$0]  %s3046_s0, 192, %s18_s13, [#allocation3], %s3050_s1, %s3050_s1, %s3051_s25  }
  0x14   :  { %s1833_s28 = scalar_lea.vmem %s31_s16, 32  ;;  %p1838_p9 = scmp.lt.s32.totalorder %s31_s16, %s31_s16 }
  0x15   :  { %p1834_p8 = scmp.ne.s32.totalorder %s31_s16, %s1833_s28  ;;  %p1839_p10 = scmp.lt.s32.totalorder %s1833_s28, %s1833_s28 }
  0x17   :  { %p1840_p11 = por %p1839_p10, %p1838_p9 }
  0x19   :  { %p1841_p12 = pnand %p1840_p11, %p1834_p8 }
  0x1b   :  { %1844 = shalt.err (!%p1841_p12)
}
  0x1c   :  { %s1890_s29 = smov [#allocation6]   ;;  %s40_s5 = sshll.u32 %s3048_s2, 4  ;;  %s41_s5 = int_to_ptr.vmem [resolvable:$true] %s40_s5 }
  0x1d   :  { %33 = dma.vmem_to_smem %s31_s16, 32, %s1890_s29, [#allocation5]  }
  0x1e   :  { %s1845_s6 = scalar_lea.vmem %s41_s5, 16  ;;  %p1850_p0 = scmp.lt.s32.totalorder %s41_s5, %s41_s5 }
  0x1f   :  { %p1846_p13 = scmp.ne.s32.totalorder %s41_s5, %s1845_s6  ;;  %p1851_p1 = scmp.lt.s32.totalorder %s1845_s6, %s1845_s6 }
  0x21   :  { %p1852_p2 = por %p1851_p1, %p1850_p0 }
  0x23   :  { %p1853_p3 = pnand %p1852_p2, %p1846_p13 }
  0x25   :  { %1856 = shalt.err (!%p1853_p3)
}
  0x26   :  { %s1891_s0 = smov [#allocation7]  }
  0x27   :  { %43 = dma.vmem_to_smem %s41_s5, 16, %s1891_s0, [#allocation8]  }
  0x28   :  { %1879 = dma.done.wait [#allocation3], 192  }
  0x29   :  { %1880 = vsyncadd [#allocation3], 4294967104 }
  0x2a   :  { %1881 = dma.done.wait [#allocation5], 32  }
  0x2b   :  { %1882 = vsyncadd [#allocation5], 4294967264 }
  0x2c   :  { %1883 = dma.done.wait [#allocation8], 16  }
  0x2d   :  { %1884 = vsyncadd [#allocation8], 4294967280 }
  0x2e   :  { %53 = sfence }
  0x2f   :  { %s1684_s7 = sld [smem:[#allocation6 + $0x37]]  ;;  %s1630_s8 = sld [smem:[#allocation6 + $0x1]]  ;;  %v1942_v0 = vld [vmem:[#allocation2] sm:$0xf]  ;;  %vm247_vm0 = vcmask 1039360   ;;  %vm302_vm1 = vcmask 1031168  }
  0x30   :  { %s1711_s2 = sld [smem:[#allocation6 + $0x52]]  ;;  %s1657_s9 = sld [smem:[#allocation6 + $0x1c]]  ;;  %vm357_vm2 = vcmask 916480   ;;  %vm412_vm3 = vcmask 908288   ;;  %vm467_vm4 = vcmask 900096   ;;  %vm522_vm5 = vcmask 785408  }
  0x31   :  { %s1765_s10 = sld [smem:[#allocation6 + $0x88]]  ;;  %s1738_s11 = sld [smem:[#allocation6 + $0x6d]]  ;;  %vm577_vm6 = vcmask 777216   ;;  %vm632_vm7 = vcmask 769024   ;;  %vm1587_vm8 = vcmask 1041408   ;;  %vm1588_vm9 = vcmask 764930  }
  0x32   :  { %s1658_s12 = sld [smem:[#allocation6 + $0x1d]]  ;;  %s1631_s13 = sld [smem:[#allocation6 + $0x2]]  ;;  %vm2997_vm10 = vmor %vm1588_vm9, %vm1587_vm8 }
  0x33   :  { %s1892_s14 = smov 127   ;;  %s1712_s15 = sld [smem:[#allocation6 + $0x53]] }
  0x34   :  { %s1685_s16 = sld [smem:[#allocation6 + $0x38]]  ;;  %s1766_s17 = sld [smem:[#allocation6 + $0x89]] }
  0x35   :  { %v260_v1 = vstv %s1684_s7  ;;  %v241_v3 = vstv %s1630_s8  ;;  %s1739_s18 = sld [smem:[#allocation6 + $0x6e]]  ;;  %s1632_s20 = sld [smem:[#allocation6 + $0x3]] }
  0x36   :  { %v261_v2 = vmul.f32 %v260_v1, %v1942_v0  ;;  %v269_v4 = vstv %s1711_s2  ;;  %v242_v5 = vmul.f32 %v241_v3, %v1942_v0  ;;  %v251_v6 = vstv %s1657_s9  ;;  %s1659_s19 = sld [smem:[#allocation6 + $0x1e]]  ;;  %s1893_s21 = smov 126  }
  0x37   :  { %v270_v7 = vmul.f32 %v269_v4, %v1942_v0  ;;  %v252_v8 = vmul.f32 %v251_v6, %v1942_v0  ;;  %v287_v9 = vstv %s1765_s10  ;;  %v278_v10 = vstv %s1738_s11  ;;  %s1713_s22 = sld [smem:[#allocation6 + $0x54]]  ;;  %s1686_s23 = sld [smem:[#allocation6 + $0x39]] }
  0x38   :  { %263 = vrot.lane.b32.xlu1 %v261_v2, %s1892_s14  ;;  %244 = vrot.lane.b32.xlu0 %v242_v5, %s1892_s14  ;;  %v288_v11 = vmul.f32 %v287_v9, %v1942_v0  ;;  %v279_v12 = vmul.f32 %v278_v10, %v1942_v0  ;;  %v306_v13 = vstv %s1658_s12  ;;  %v296_v14 = vstv %s1631_s13  ;;  %s1767_s24 = sld [smem:[#allocation6 + $0x8a]]  ;;  %s1740_s26 = sld [smem:[#allocation6 + $0x6f]] }
  0x39   :  { %v307_v15 = vmul.f32 %v306_v13, %v1942_v0  ;;  %v297_v16 = vmul.f32 %v296_v14, %v1942_v0  ;;  %v324_v17 = vstv %s1712_s15  ;;  %s1660_s27 = sld [smem:[#allocation6 + $0x1f]]  ;;  %s1633_s28 = sld [smem:[#allocation6 + $0x4]] }
  0x3a   :  { %v315_v18 = vstv %s1685_s16  ;;  %v325_v19 = vmul.f32 %v324_v17, %v1942_v0  ;;  %v342_v21 = vstv %s1766_s17  ;;  %s1894_s29 = smov 112   ;;  %s1714_s30 = sld [smem:[#allocation6 + $0x55]] }
  0x3b   :  { %v316_v20 = vmul.f32 %v315_v18, %v1942_v0  ;;  %v333_v22 = vstv %s1739_s18  ;;  %v343_v23 = vmul.f32 %v342_v21, %v1942_v0  ;;  %v351_v26 = vstv %s1632_s20  ;;  %s1687_s4 = sld [smem:[#allocation6 + $0x3a]]  ;;  %s1768_s5 = sld [smem:[#allocation6 + $0x8b]] }
  0x3c   :  { %272 = vrot.lane.b32.xlu1 %v270_v7, %s1892_s14  ;;  %254 = vrot.lane.b32.xlu0 %v252_v8, %s1892_s14  ;;  %v334_v24 = vmul.f32 %v333_v22, %v1942_v0  ;;  %v361_v25 = vstv %s1659_s19  ;;  %v352_v28 = vmul.f32 %v351_v26, %v1942_v0  ;;  %s1741_s6 = sld [smem:[#allocation6 + $0x70]]  ;;  %s1634_s7 = sld [smem:[#allocation6 + $0x5]] }
  0x3d   :  { %v362_v27 = vmul.f32 %v361_v25, %v1942_v0  ;;  %v379_v29 = vstv %s1713_s22  ;;  %v370_v30 = vstv %s1686_s23  ;;  %s1661_s0 = sld [smem:[#allocation6 + $0x20]]  ;;  %s1895_s8 = smov 111  }
  0x3e   :  { %v380_v31 = vmul.f32 %v379_v29, %v1942_v0  ;;  %v371_v32 = vmul.f32 %v370_v30, %v1942_v0  ;;  %v397_v33 = vstv %s1767_s24  ;;  %v388_v34 = vstv %s1740_s26  ;;  %s1715_s2 = sld [smem:[#allocation6 + $0x56]]  ;;  %s1688_s9 = sld [smem:[#allocation6 + $0x3b]] }
  0x3f   :  { %v398_v35 = vmul.f32 %v397_v33, %v1942_v0  ;;  %v389_v36 = vmul.f32 %v388_v34, %v1942_v0  ;;  %v416_v37 = vstv %s1660_s27  ;;  %v406_v38 = vstv %s1633_s28  ;;  %s1769_s10 = sld [smem:[#allocation6 + $0x8c]]  ;;  %s1742_s11 = sld [smem:[#allocation6 + $0x71]]  ;;  %v2038_v34 = vld [vmem:[#allocation2 + $0x4] sm:$0xf] }
  0x40   :  { %290 = vrot.lane.b32.xlu1 %v288_v11, %s1892_s14  ;;  %281 = vrot.lane.b32.xlu0 %v279_v12, %s1892_s14  ;;  %v417_v39 = vmul.f32 %v416_v37, %v1942_v0  ;;  %v407_v40 = vmul.f32 %v406_v38, %v1942_v0  ;;  %v434_v41 = vstv %s1714_s30  ;;  %s1662_s12 = sld [smem:[#allocation6 + $0x21]]  ;;  %s1635_s13 = sld [smem:[#allocation6 + $0x6]] }
  0x41   :  { %v425_v42 = vstv %s1687_s4  ;;  %v435_v43 = vmul.f32 %v434_v41, %v1942_v0  ;;  %v452_v45 = vstv %s1768_s5  ;;  %s1896_s15 = smov 110   ;;  %s1716_s16 = sld [smem:[#allocation6 + $0x57]] }
  0x42   :  { %v426_v44 = vmul.f32 %v425_v42, %v1942_v0  ;;  %v443_v46 = vstv %s1741_s6  ;;  %v453_v47 = vmul.f32 %v452_v45, %v1942_v0  ;;  %v461_v50 = vstv %s1634_s7  ;;  %s1689_s17 = sld [smem:[#allocation6 + $0x3c]]  ;;  %s1770_s18 = sld [smem:[#allocation6 + $0x8d]] }
  0x43   :  { %v444_v48 = vmul.f32 %v443_v46, %v1942_v0  ;;  %v471_v49 = vstv %s1661_s0  ;;  %v462_v52 = vmul.f32 %v461_v50, %v1942_v0  ;;  %s1743_s19 = sld [smem:[#allocation6 + $0x72]]  ;;  %s1636_s22 = sld [smem:[#allocation6 + $0x7]] }
  0x44   :  { %309 = vrot.lane.b32.xlu1 %v307_v15, %s1893_s21  ;;  %299 = vrot.lane.b32.xlu0 %v297_v16, %s1893_s21  ;;  %v472_v51 = vmul.f32 %v471_v49, %v1942_v0  ;;  %v489_v53 = vstv %s1715_s2  ;;  %v480_v54 = vstv %s1688_s9  ;;  %s1663_s20 = sld [smem:[#allocation6 + $0x22]]  ;;  %s1897_s23 = smov 96  }
  0x45   :  { %v490_v55 = vmul.f32 %v489_v53, %v1942_v0  ;;  %v481_v56 = vmul.f32 %v480_v54, %v1942_v0  ;;  %v507_v57 = vstv %s1769_s10  ;;  %v498_v58 = vstv %s1742_s11  ;;  %s1717_s24 = sld [smem:[#allocation6 + $0x58]]  ;;  %s1690_s26 = sld [smem:[#allocation6 + $0x3d]] }
  0x46   :  { %v508_v59 = vmul.f32 %v507_v57, %v1942_v0  ;;  %v499_v60 = vmul.f32 %v498_v58, %v1942_v0  ;;  %v526_v61 = vstv %s1662_s12  ;;  %v516_v62 = vstv %s1635_s13  ;;  %s1771_s27 = sld [smem:[#allocation6 + $0x8e]]  ;;  %s1744_s28 = sld [smem:[#allocation6 + $0x73]] }
  0x47   :  { %v527_v63 = vmul.f32 %v526_v61, %v1942_v0  ;;  %v517_v1 = vmul.f32 %v516_v62, %v1942_v0  ;;  %v544_v2 = vstv %s1716_s16  ;;  %s1664_s30 = sld [smem:[#allocation6 + $0x23]]  ;;  %s1637_s4 = sld [smem:[#allocation6 + $0x8]] }
  0x48   :  { %327 = vrot.lane.b32.xlu1 %v325_v19, %s1893_s21  ;;  %318 = vrot.lane.b32.xlu0 %v316_v20, %s1893_s21  ;;  %v535_v3 = vstv %s1689_s17  ;;  %v545_v4 = vmul.f32 %v544_v2, %v1942_v0  ;;  %v562_v6 = vstv %s1770_s18  ;;  %s1898_s5 = smov 95   ;;  %s1718_s6 = sld [smem:[#allocation6 + $0x59]] }
  0x49   :  { %v536_v5 = vmul.f32 %v535_v3, %v1942_v0  ;;  %v553_v7 = vstv %s1743_s19  ;;  %v563_v8 = vmul.f32 %v562_v6, %v1942_v0  ;;  %v571_v11 = vstv %s1636_s22  ;;  %s1691_s0 = sld [smem:[#allocation6 + $0x3e]]  ;;  %s1772_s7 = sld [smem:[#allocation6 + $0x8f]] }
  0x4a   :  { %v554_v9 = vmul.f32 %v553_v7, %v1942_v0  ;;  %v581_v10 = vstv %s1663_s20  ;;  %v572_v13 = vmul.f32 %v571_v11, %v1942_v0  ;;  %s1745_s2 = sld [smem:[#allocation6 + $0x74]]  ;;  %s1666_s9 = sld [smem:[#allocation6 + $0x25]] }
  0x4b   :  { %v582_v12 = vmul.f32 %v581_v10, %v1942_v0  ;;  %v599_v14 = vstv %s1717_s24  ;;  %v590_v15 = vstv %s1690_s26  ;;  %s1639_s10 = sld [smem:[#allocation6 + $0xa]]  ;;  %s1899_s11 = smov 94  }
  0x4c   :  { %345 = vrot.lane.b32.xlu1 %v343_v23, %s1893_s21  ;;  %336 = vrot.lane.b32.xlu0 %v334_v24, %s1893_s21  ;;  %v600_v16 = vmul.f32 %v599_v14, %v1942_v0  ;;  %v591_v17 = vmul.f32 %v590_v15, %v1942_v0  ;;  %v617_v18 = vstv %s1771_s27  ;;  %v608_v19 = vstv %s1744_s28  ;;  %s1720_s12 = sld [smem:[#allocation6 + $0x5b]]  ;;  %s1693_s13 = sld [smem:[#allocation6 + $0x40]] }
  0x4d   :  { %v618_v20 = vmul.f32 %v617_v18, %v1942_v0  ;;  %v609_v21 = vmul.f32 %v608_v19, %v1942_v0  ;;  %v636_v22 = vstv %s1664_s30  ;;  %v626_v23 = vstv %s1637_s4  ;;  %s1774_s16 = sld [smem:[#allocation6 + $0x91]]  ;;  %s1747_s17 = sld [smem:[#allocation6 + $0x76]] }
  0x4e   :  { %v637_v24 = vmul.f32 %v636_v22, %v1942_v0  ;;  %v627_v25 = vmul.f32 %v626_v23, %v1942_v0  ;;  %v654_v26 = vstv %s1718_s6  ;;  %s1667_s18 = sld [smem:[#allocation6 + $0x26]]  ;;  %s1640_s19 = sld [smem:[#allocation6 + $0xb]] }
  0x4f   :  { %v672_v30 = vstv %s1772_s7  ;;  %s1721_s20 = sld [smem:[#allocation6 + $0x5c]]  ;;  %s1694_s22 = sld [smem:[#allocation6 + $0x41]] }
  0x50   :  { %364 = vrot.lane.b32.xlu1 %v362_v27, %s1894_s29  ;;  %354 = vrot.lane.b32.xlu0 %v352_v28, %s1894_s29  ;;  %v645_v27 = vstv %s1691_s0  ;;  %v655_v28 = vmul.f32 %v654_v26, %v1942_v0  ;;  %s1775_s24 = sld [smem:[#allocation6 + $0x92]]  ;;  %s1748_s26 = sld [smem:[#allocation6 + $0x77]] }
  0x51   :  { %v646_v29 = vmul.f32 %v645_v27, %v1942_v0  ;;  %s1668_s27 = sld [smem:[#allocation6 + $0x27]]  ;;  %s1641_s28 = sld [smem:[#allocation6 + $0xc]] }
  0x52   :  { %s1722_s30 = sld [smem:[#allocation6 + $0x5d]]  ;;  %s1695_s4 = sld [smem:[#allocation6 + $0x42]] }
  0x53   :  { %s1776_s6 = sld [smem:[#allocation6 + $0x93]]  ;;  %s1749_s0 = sld [smem:[#allocation6 + $0x78]] }
  0x54   :  { %382 = vrot.lane.b32.xlu1 %v380_v31, %s1894_s29  ;;  %373 = vrot.lane.b32.xlu0 %v371_v32, %s1894_s29  ;;  %v663_v31 = vstv %s1745_s2  ;;  %v673_v32 = vmul.f32 %v672_v30, %v1942_v0  ;;  %s1669_s7 = sld [smem:[#allocation6 + $0x28]]  ;;  %s1642_s2 = sld [smem:[#allocation6 + $0xd]] }
  0x55   :  { %v664_v33 = vmul.f32 %v663_v31, %v1942_v0  ;;  %s2218_s1 = sld [smem:[#allocation6 + $0x13]]  ;;  %s2239_s25 = sld [smem:[#allocation6 + $0x9a]] }
  0x57   :  { %v809_v61 = vstv %s1641_s28  ;;  %s2138_s28 = sld [smem:[#allocation6]] }
  0x58   :  { %400 = vrot.lane.b32.xlu1 %v398_v35, %s1894_s29  ;;  %391 = vrot.lane.b32.xlu0 %v389_v36, %s1894_s29  ;;  %v710_v35 = vstv %s1666_s9  ;;  %v701_v36 = vstv %s1639_s10  ;;  %s1723_s9 = sld [smem:[#allocation6 + $0x5e]]  ;;  %s1696_s10 = sld [smem:[#allocation6 + $0x43]] }
  0x59   :  { %v711_v37 = vmul.f32 %v710_v35, %v2038_v34  ;;  %v702_v38 = vmul.f32 %v701_v36, %v2038_v34  ;;  %v836_v2 = vstv %s1722_s30  ;;  %v845_v10 = vstv %s1749_s0  ;;  %s2142_s30 = sld [smem:[#allocation6 + $0x51]]  ;;  %s2153_s0 = sld [smem:[#allocation6 + $0x60]] }
  0x5a   :  { %v837_v6 = vmul.f32 %v836_v2, %v2038_v34  ;;  %v872_v14 = vstv %s1669_s7  ;;  %s2155_s7 = sld [smem:[#allocation6 + $0x6c]] }
  0x5b   :  { %v873_v18 = vmul.f32 %v872_v14, %v2038_v34 }
  0x5c   :  { %419 = vrot.lane.b32.xlu1 %v417_v39, %s1895_s8  ;;  %409 = vrot.lane.b32.xlu0 %v407_v40, %s1895_s8  ;;  %v728_v39 = vstv %s1720_s12  ;;  %v719_v40 = vstv %s1693_s13  ;;  %s1777_s12 = sld [smem:[#allocation6 + $0x94]]  ;;  %s1750_s13 = sld [smem:[#allocation6 + $0x79]] }
  0x5d   :  { %v729_v41 = vmul.f32 %v728_v39, %v2038_v34  ;;  %v720_v42 = vmul.f32 %v719_v40, %v2038_v34 }
  0x5e   :  { %v881_v22 = vstv %s1696_s10  ;;  %s2166_s10 = sld [smem:[#allocation6 + $0x7b]] }
  0x60   :  { %437 = vrot.lane.b32.xlu1 %v435_v43, %s1895_s8  ;;  %428 = vrot.lane.b32.xlu0 %v426_v44, %s1895_s8  ;;  %v746_v43 = vstv %s1774_s16  ;;  %v737_v44 = vstv %s1747_s17  ;;  %s1670_s16 = sld [smem:[#allocation6 + $0x29]]  ;;  %s1643_s17 = sld [smem:[#allocation6 + $0xe]] }
  0x61   :  { %v747_v45 = vmul.f32 %v746_v43, %v2038_v34  ;;  %v738_v46 = vmul.f32 %v737_v44, %v2038_v34 }
  0x62   :  { %v908_v26 = vstv %s1777_s12  ;;  %s2170_s12 = sld [smem:[#allocation6 + $0x2b]] }
  0x63   :  { %v909_v30 = vmul.f32 %v908_v26, %v2038_v34 }
  0x64   :  { %455 = vrot.lane.b32.xlu1 %v453_v47, %s1895_s8  ;;  %446 = vrot.lane.b32.xlu0 %v444_v48, %s1895_s8  ;;  %v764_v47 = vstv %s1667_s18  ;;  %v755_v48 = vstv %s1640_s19  ;;  %s2104_s18 = sld [smem:[#allocation6 + $0x5f]]  ;;  %s2108_s19 = sld [smem:[#allocation6 + $0x44]] }
  0x65   :  { %v765_v49 = vmul.f32 %v764_v47, %v2038_v34  ;;  %v756_v50 = vmul.f32 %v755_v48, %v2038_v34 }
  0x66   :  { %v917_v35 = vstv %s1643_s17  ;;  %s2179_s17 = sld [smem:[#allocation6 + $0x46]] }
  0x68   :  { %474 = vrot.lane.b32.xlu1 %v472_v51, %s1896_s15  ;;  %464 = vrot.lane.b32.xlu0 %v462_v52, %s1896_s15  ;;  %v782_v51 = vstv %s1721_s20  ;;  %v773_v52 = vstv %s1694_s22  ;;  %s2116_s20 = sld [smem:[#allocation6 + $0x95]]  ;;  %s2120_s22 = sld [smem:[#allocation6 + $0x7a]] }
  0x69   :  { %v783_v53 = vmul.f32 %v782_v51, %v2038_v34  ;;  %v774_v54 = vmul.f32 %v773_v52, %v2038_v34 }
  0x6a   :  { %v944_v39 = vstv %s2104_s18  ;;  %s2184_s18 = sld [smem:[#allocation6 + $0x97]] }
  0x6b   :  { %v945_v43 = vmul.f32 %v944_v39, %v2038_v34 }
  0x6c   :  { %492 = vrot.lane.b32.xlu1 %v490_v55, %s1896_s15  ;;  %483 = vrot.lane.b32.xlu0 %v481_v56, %s1896_s15  ;;  %v800_v55 = vstv %s1775_s24  ;;  %v791_v56 = vstv %s1748_s26  ;;  %s2129_s24 = sld [smem:[#allocation6 + $0x2a]]  ;;  %s2134_s26 = sld [smem:[#allocation6 + $0xf]] }
  0x6d   :  { %v801_v57 = vmul.f32 %v800_v55, %v2038_v34  ;;  %v792_v58 = vmul.f32 %v791_v56, %v2038_v34  ;;  %v223_v56 = vstv %s2138_s28  ;;  %s2208_s28 = sld [smem:[#allocation6 + $0x7d]]  ;;  %v1043_v26 = vstv %s2179_s17  ;;  %s2306_s17 = sld [smem:[#allocation6 + $0x9b]] }
  0x6e   :  { %v953_v47 = vstv %s2120_s22  ;;  %s2193_s22 = sld [smem:[#allocation6 + $0x11]] }
  0x70   :  { %510 = vrot.lane.b32.xlu1 %v508_v59, %s1896_s15  ;;  %501 = vrot.lane.b32.xlu0 %v499_v60, %s1896_s15  ;;  %v818_v59 = vstv %s1668_s27  ;;  %s2136_s27 = sld [smem:[#allocation6 + $0x36]] }
  0x72   :  { %v980_v51 = vstv %s2129_s24  ;;  %s2199_s24 = sld [smem:[#allocation6 + $0x62]] }
  0x74   :  { %529 = vrot.lane.b32.xlu1 %v527_v63, %s1897_s23  ;;  %519 = vrot.lane.b32.xlu0 %v517_v1, %s1897_s23  ;;  %v819_v63 = vmul.f32 %v818_v59, %v2038_v34  ;;  %v810_v1 = vmul.f32 %v809_v61, %v2038_v34  ;;  %v998_v61 = vstv %s2153_s0  ;;  %s2230_s0 = sld [smem:[#allocation6 + $0x64]] }
  0x78   :  { %547 = vrot.lane.b32.xlu1 %v545_v4, %s1897_s23  ;;  %538 = vrot.lane.b32.xlu0 %v536_v5, %s1897_s23  ;;  %v827_v4 = vstv %s1695_s4  ;;  %s2144_s4 = sld [smem:[#allocation6 + $0x1b]] }
  0x79   :  { %v828_v7 = vmul.f32 %v827_v4, %v2038_v34  ;;  %v2221_v4 = vmul.f32 %v223_v56, %v1942_v0 }
  0x7c   :  { %565 = vrot.lane.b32.xlu1 %v563_v8, %s1897_s23  ;;  %556 = vrot.lane.b32.xlu0 %v554_v9, %s1897_s23  ;;  %v854_v8 = vstv %s1776_s6  ;;  %s2148_s6 = sld [smem:[#allocation6 + $0x87]] }
  0x80   :  { %584 = vrot.lane.b32.xlu1 %v582_v12, %s1898_s5  ;;  %574 = vrot.lane.b32.xlu0 %v572_v13, %s1898_s5  ;;  %v855_v12 = vmul.f32 %v854_v8, %v2038_v34  ;;  %v846_v13 = vmul.f32 %v845_v10, %v2038_v34 }
  0x82   :  { %v238_v8 = vstv %s2148_s6  ;;  %s2248_s6 = sld [smem:[#allocation6 + $0x2f]] }
  0x84   :  { %602 = vrot.lane.b32.xlu1 %v600_v16, %s1898_s5  ;;  %593 = vrot.lane.b32.xlu0 %v591_v17, %s1898_s5  ;;  %v863_v16 = vstv %s1642_s2  ;;  %s2160_s2 = sld [smem:[#allocation6 + $0x45]] }
  0x85   :  { %v864_v19 = vmul.f32 %v863_v16, %v2038_v34  ;;  %v1007_v16 = vstv %s2166_s10  ;;  %s2279_s10 = sld [smem:[#allocation6 + $0x65]] }
  0x86   :  { %v1008_v39 = vmul.f32 %v1007_v16, %v2038_v34 }
  0x88   :  { %620 = vrot.lane.b32.xlu1 %v618_v20, %s1898_s5  ;;  %611 = vrot.lane.b32.xlu0 %v609_v21, %s1898_s5  ;;  %v890_v20 = vstv %s1723_s9  ;;  %s2164_s9 = sld [smem:[#allocation6 + $0x96]] }
  0x8a   :  { %v989_v2 = vstv %s2160_s2  ;;  %s2232_s2 = sld [smem:[#allocation6 + $0x49]] }
  0x8c   :  { %639 = vrot.lane.b32.xlu1 %v637_v24, %s1899_s11  ;;  %629 = vrot.lane.b32.xlu0 %v627_v25, %s1899_s11  ;;  %v891_v24 = vmul.f32 %v890_v20, %v2038_v34  ;;  %v882_v25 = vmul.f32 %v881_v22, %v2038_v34 }
  0x8e   :  { %v1016_v14 = vstv %s2164_s9  ;;  %s2270_s9 = sld [smem:[#allocation6 + $0x24]] }
  0x90   :  { %657 = vrot.lane.b32.xlu1 %v655_v28, %s1899_s11  ;;  %648 = vrot.lane.b32.xlu0 %v646_v29, %s1899_s11  ;;  %v899_v28 = vstv %s1750_s13  ;;  %s2172_s13 = sld [smem:[#allocation6 + $0x10]] }
  0x91   :  { %v900_v31 = vmul.f32 %v899_v28, %v2038_v34  ;;  %v1070_v28 = vstv %s2184_s18  ;;  %s2308_s18 = sld [smem:[#allocation6 + $0x3f]] }
  0x94   :  { %675 = vrot.lane.b32.xlu1 %v673_v32, %s1899_s11  ;;  %666 = vrot.lane.b32.xlu0 %v664_v33, %s1899_s11  ;;  %v926_v32 = vstv %s1670_s16  ;;  %s2177_s16 = sld [smem:[#allocation6 + $0x61]] }
  0x96   :  { %v1025_v20 = vstv %s2172_s13  ;;  %s2294_s13 = sld [smem:[#allocation6 + $0x4a]] }
  0x98   :  { %713 = vrot.lane.b32.xlu1 %v711_v37, %s1892_s14  ;;  %704 = vrot.lane.b32.xlu0 %v702_v38, %s1892_s14  ;;  %v927_v37 = vmul.f32 %v926_v32, %v2038_v34  ;;  %v918_v38 = vmul.f32 %v917_v35, %v2038_v34 }
  0x9a   :  { %v1052_v22 = vstv %s2177_s16  ;;  %s2296_s16 = sld [smem:[#allocation6 + $0x5a]] }
  0x9c   :  { %731 = vrot.lane.b32.xlu1 %v729_v41, %s1892_s14  ;;  %722 = vrot.lane.b32.xlu0 %v720_v42, %s1892_s14  ;;  %v935_v41 = vstv %s2108_s19  ;;  %s2186_s19 = sld [smem:[#allocation6 + $0x7c]] }
  0x9d   :  { %v936_v44 = vmul.f32 %v935_v41, %v2038_v34 }
  0xa0   :  { %749 = vrot.lane.b32.xlu1 %v747_v45, %s1892_s14  ;;  %740 = vrot.lane.b32.xlu0 %v738_v46, %s1892_s14  ;;  %v962_v45 = vstv %s2116_s20  ;;  %s2191_s20 = sld [smem:[#allocation6 + $0x2c]] }
  0xa4   :  { %767 = vrot.lane.b32.xlu1 %v765_v49, %s1893_s21  ;;  %758 = vrot.lane.b32.xlu0 %v756_v50, %s1893_s21  ;;  %v963_v49 = vmul.f32 %v962_v45, %v2038_v34  ;;  %v954_v50 = vmul.f32 %v953_v47, %v2038_v34  ;;  %v2288_v45 = vmul.f32 %v1070_v28, %v2038_v34 }
  0xa8   :  { %785 = vrot.lane.b32.xlu1 %v783_v53, %s1893_s21  ;;  %776 = vrot.lane.b32.xlu0 %v774_v54, %s1893_s21  ;;  %v971_v53 = vstv %s2134_s26  ;;  %v229_v54 = vstv %s2136_s27  ;;  %s2201_s26 = sld [smem:[#allocation6 + $0x47]]  ;;  %s2206_s27 = sld [smem:[#allocation6 + $0x98]] }
  0xa9   :  { %v972_v59 = vmul.f32 %v971_v53, %v2038_v34  ;;  %v1106_v53 = vstv %s2199_s24  ;;  %s2594_s24 = sld [smem:[#allocation6 + $0x4b]] }
  0xaa   :  { %v2064_v60 = vpop.permute.xlu1 %263  ;;  %v2066_v62 = vpop.permute.xlu0 %244  ;;  %v2329_v16 = vmul.f32 %v1106_v53, %v2038_v34 }
  0xac   :  { %803 = vrot.lane.b32.xlu1 %v801_v57, %s1893_s21  ;;  %794 = vrot.lane.b32.xlu0 %v792_v58, %s1893_s21  ;;  %v232_v57 = vstv %s2142_s30  ;;  %v981_v58 = vmul.f32 %v980_v51, %v2038_v34  ;;  %s2216_s30 = sld [smem:[#allocation6 + $0x2e]] }
  0xae   :  { %v2072_v3 = vpop.permute.xlu1 %272  ;;  %v2074_v5 = vpop.permute.xlu0 %254  ;;  %v1124_v56 = vstv %s2206_s27  ;;  %s2614_s27 = sld [smem:[#allocation6 + $0x81]] }
  0xb0   :  { %821 = vrot.lane.b32.xlu1 %v819_v63, %s1894_s29  ;;  %812 = vrot.lane.b32.xlu0 %v810_v1, %s1894_s29  ;;  %v2211_v63 = vmul.f32 %v229_v54, %v1942_v0  ;;  %v1097_v54 = vstv %s2201_s26  ;;  %s2610_s26 = sld [smem:[#allocation6 + $0x9c]] }
  0xb2   :  { %v2080_v9 = vpop.permute.xlu1 %290  ;;  %v2082_v11 = vpop.permute.xlu0 %281 }
  0xb4   :  { %839 = vrot.lane.b32.xlu1 %v837_v6, %s1894_s29  ;;  %830 = vrot.lane.b32.xlu0 %v828_v7, %s1894_s29  ;;  %v2224_v6 = vmul.f32 %v232_v57, %v1942_v0  ;;  %v226_v7 = vstv %s2144_s4  ;;  %s2241_s4 = sld [smem:[#allocation6 + $0x7f]] }
  0xb6   :  { %v2088_v15 = vpop.permute.xlu1 %309  ;;  %v2090_v17 = vpop.permute.xlu0 %299 }
  0xb8   :  { %857 = vrot.lane.b32.xlu1 %v855_v12, %s1894_s29  ;;  %848 = vrot.lane.b32.xlu0 %v846_v13, %s1894_s29  ;;  %v235_v12 = vstv %s2155_s7  ;;  %v999_v13 = vmul.f32 %v998_v61, %v2038_v34  ;;  %s2268_s7 = sld [smem:[#allocation6 + $0x14]]  ;;  %v1162_v61 = vstv %s2216_s30  ;;  %s2628_s30 = sld [smem:[#allocation6 + $0x16]] }
  0xb9   :  { %v2262_v32 = vmul.f32 %v235_v12, %v1942_v0  ;;  %v1171_v12 = vstv %s2232_s2  ;;  %s2648_s2 = sld [smem:[#allocation6 + $0x9d]] }
  0xba   :  { %v2096_v21 = vpop.permute.xlu1 %327  ;;  %v2098_v23 = vpop.permute.xlu0 %318 }
  0xbc   :  { %875 = vrot.lane.b32.xlu1 %v873_v18, %s1895_s8  ;;  %866 = vrot.lane.b32.xlu0 %v864_v19, %s1895_s8  ;;  %v990_v18 = vmul.f32 %v989_v2, %v2038_v34  ;;  %v1034_v19 = vstv %s2170_s12  ;;  %s2281_s12 = sld [smem:[#allocation6 + $0x9]]  ;;  %v1153_v2 = vstv %s2218_s1  ;;  %s2371_s1 = sld [smem:[#allocation6 + $0x90]] }
  0xbd   :  { %v1035_v41 = vmul.f32 %v1034_v19, %v2038_v34  ;;  %v2335_v19 = vmul.f32 %v1124_v56, %v2038_v34 }
  0xbe   :  { %v2106_v27 = vpop.permute.xlu1 %345  ;;  %v2110_v29 = vpop.permute.xlu0 %336 }
  0xc0   :  { %893 = vrot.lane.b32.xlu1 %v891_v24, %s1895_s8  ;;  %884 = vrot.lane.b32.xlu0 %v882_v25, %s1895_s8  ;;  %v2251_v24 = vmul.f32 %v226_v7, %v1942_v0  ;;  %v1180_v7 = vstv %s2230_s0  ;;  %s2640_s0 = sld [smem:[#allocation6 + $0x4c]] }
  0xc2   :  { %v2118_v33 = vpop.permute.xlu1 %364  ;;  %v2122_v36 = vpop.permute.xlu0 %354 }
  0xc4   :  { %911 = vrot.lane.b32.xlu1 %v909_v30, %s1895_s8  ;;  %902 = vrot.lane.b32.xlu0 %v900_v31, %s1895_s8  ;;  %v1061_v30 = vstv %s2186_s19  ;;  %v2259_v31 = vmul.f32 %v238_v8, %v1942_v0  ;;  %v1026_v0 = vmul.f32 %v1025_v20, %v2038_v34  ;;  %s2325_s19 = sld [smem:[#allocation6 + $0x80]]  ;;  %v1216_v20 = vstv %s2248_s6  ;;  %s2660_s6 = sld [smem:[#allocation6 + $0x32]] }
  0xc5   :  { %v2291_v47 = vmul.f32 %v1061_v30, %v2038_v34 }
  0xc6   :  { %v2131_v40 = vpop.permute.xlu1 %382  ;;  %v2140_v42 = vpop.permute.xlu0 %373 }
  0xc8   :  { %929 = vrot.lane.b32.xlu1 %v927_v37, %s1896_s15  ;;  %920 = vrot.lane.b32.xlu0 %v918_v38, %s1896_s15  ;;  %v1017_v37 = vmul.f32 %v1016_v14, %v2038_v34  ;;  %v1088_v38 = vstv %s2191_s20  ;;  %v1189_v14 = vstv %s2241_s4  ;;  %s2572_s20 = sld [smem:[#allocation6 + $0x30]]  ;;  %s2652_s4 = sld [smem:[#allocation6 + $0x82]] }
  0xc9   :  { %v2301_v51 = vmul.f32 %v1088_v38, %v2038_v34 }
  0xca   :  { %v2157_v46 = vpop.permute.xlu1 %400  ;;  %v2162_v48 = vpop.permute.xlu0 %391 }
  0xcc   :  { %947 = vrot.lane.b32.xlu1 %v945_v43, %s1896_s15  ;;  %938 = vrot.lane.b32.xlu0 %v936_v44, %s1896_s15  ;;  %v2277_v43 = vmul.f32 %v1052_v22, %v2038_v34  ;;  %v2285_v44 = vmul.f32 %v1043_v26, %v2038_v34 }
  0xce   :  { %v2181_v52 = vpop.permute.xlu1 %419  ;;  %v2189_v55 = vpop.permute.xlu0 %409 }
  0xd0   :  { %965 = vrot.lane.b32.xlu1 %v963_v49, %s1896_s15  ;;  %956 = vrot.lane.b32.xlu0 %v954_v50, %s1896_s15  ;;  %v1079_v49 = vstv %s2193_s22  ;;  %s2576_s22 = sld [smem:[#allocation6 + $0x15]] }
  0xd1   :  { %v2320_v8 = vmul.f32 %v1079_v49, %v2038_v34 }
  0xd2   :  { %v2213_v1 = vpop.permute.xlu1 %437  ;;  %v2228_v10 = vpop.permute.xlu0 %428 }
  0xd4   :  { %983 = vrot.lane.b32.xlu1 %v981_v58, %s1897_s23  ;;  %974 = vrot.lane.b32.xlu0 %v972_v59, %s1897_s23  ;;  %v1115_v58 = vstv %s2208_s28  ;;  %v2313_v59 = vld [vmem:[#allocation2 + $0x8] sm:$0xf]  ;;  %s2624_s28 = sld [smem:[#allocation6 + $0x31]] }
  0xd5   :  { %v2341_v26 = vmul.f32 %v1115_v58, %v2038_v34  ;;  %v2344_v28 = vmul.f32 %v1162_v61, %v2313_v59  ;;  %v2347_v30 = vmul.f32 %v1153_v2, %v2313_v59  ;;  %v2361_v53 = vmul.f32 %v1189_v14, %v2313_v59 }
  0xd6   :  { %v2253_v25 = vpop.permute.xlu1 %455  ;;  %v2264_v35 = vpop.permute.xlu0 %446  ;;  %v2366_v56 = vmul.f32 %v1216_v20, %v2313_v59  ;;  %v1234_v58 = vstv %s2279_s10  ;;  %v686_v61 = vstv %s2270_s9  ;;  %v683_v2 = vstv %s2281_s12  ;;  %s2676_s9 = sld [smem:[#allocation6 + $0x4d]]  ;;  %s2684_s10 = sld [smem:[#allocation6 + $0x9e]] }
  0xd7   :  { %3055 = vst [vmem:[#allocation14_spill] sm:$0xff] %v2344_v28  ;;  %3056 = vst [vmem:[#allocation15_spill] sm:$0xff] %v2347_v30  ;;  %v274_v14 = vrot.slane %v2072_v3, 2  ;;  %v256_v20 = vrot.slane %v2074_v5, 2  ;;  %v2392_v30 = vmul.f32 %v1234_v58, %v2313_v59  ;;  %v2398_v28 = vmul.f32 %v683_v2, %v2038_v34  ;;  %s2688_s12 = sld [smem:[#allocation6 + $0x83]] }
  0xd8   :  { %1001 = vrot.lane.b32.xlu1 %v999_v13, %s1897_s23  ;;  %992 = vrot.lane.b32.xlu0 %v990_v18, %s1897_s23  ;;  %v1198_v13 = vstv %s2239_s25  ;;  %v2332_v18 = vmul.f32 %v1097_v54, %v2038_v34  ;;  %3061 = vst [vmem:[#allocation20_spill] sm:$0xff] %v2361_v53  ;;  %v1207_v54 = vstv %s2268_s7  ;;  %3062 = vst [vmem:[#allocation21_spill] sm:$0xff] %v2366_v56  ;;  %s2373_s25 = sld [smem:[#allocation6 + $0x75]]  ;;  %s2664_s7 = sld [smem:[#allocation6 + $0x17]] }
  0xd9   :  { %v2358_v49 = vmul.f32 %v1198_v13, %v2313_v59  ;;  %v1225_v13 = vstv %s2294_s13  ;;  %v1252_v53 = vstv %s2306_s17  ;;  %3065 = vst [vmem:[#allocation24_spill] sm:$0xff] %v2392_v30  ;;  %s2696_s13 = sld [smem:[#allocation6 + $0x33]]  ;;  %s2712_s17 = sld [smem:[#allocation6 + $0x4e]] }
  0xda   :  { %v2298_v50 = vpop.permute.xlu1 %474  ;;  %v2310_v57 = vpop.permute.xlu0 %464  ;;  %v2417_v2 = vmul.f32 %v1252_v53, %v2313_v59  ;;  %v329_v53 = vrot.slane %v2096_v21, 2 }
  0xdb   :  { %3060 = vst [vmem:[#allocation19_spill] sm:$0xff] %v2358_v49  ;;  %v689_v49 = vstv %s2308_s18  ;;  %s2720_s18 = sld [smem:[#allocation6 + $0x9f]] }
  0xdc   :  { %1019 = vrot.lane.b32.xlu1 %v1017_v37, %s1897_s23  ;;  %1010 = vrot.lane.b32.xlu0 %v1008_v39, %s1897_s23  ;;  %v2350_v37 = vmul.f32 %v1180_v7, %v2313_v59  ;;  %v2355_v39 = vmul.f32 %v1171_v12, %v2313_v59  ;;  %v265_v7 = vrot.slane %v2064_v60, 2  ;;  %v246_v12 = vrot.slane %v2066_v62, 2  ;;  %3068 = vst [vmem:[#allocation27_spill] sm:$0xff] %v2417_v2 }
  0xde   :  { %v2338_v22 = vpop.permute.xlu1 %492  ;;  %3057 = vst [vmem:[#allocation16_spill] sm:$0xff] %v2350_v37  ;;  %v2352_v38 = vpop.permute.xlu0 %483  ;;  %3059 = vst [vmem:[#allocation18_spill] sm:$0xff] %v2355_v39  ;;  %v2389_v37 = vmul.f32 %v1207_v54, %v2313_v59  ;;  %v266_v58 = vsel %vm247_vm0, %v2064_v60, %v265_v7  ;;  %v257_v60 = vsel %vm247_vm0, %v2074_v5, %v256_v20  ;;  %v283_v7 = vrot.slane %v2082_v11, 2 }
  0xdf   :  { %3058 = vst [vmem:[#allocation17_spill] sm:$0xff] %v2352_v38  ;;  %v292_v38 = vrot.slane %v2080_v9, 2  ;;  %v698_v20 = vstv %s2371_s1  ;;  %v695_v2 = vstv %s2373_s25  ;;  %v259_v30 = vadd.f32 %v257_v60, %v2251_v24  ;;  %s2732_s1 = sld [smem:[#allocation6 + $0x34]]  ;;  %s2736_s25 = sld [smem:[#allocation6 + $0x19]] }
  0xe0   :  { %1037 = vrot.lane.b32.xlu1 %v1035_v41, %s1898_s5  ;;  %1028 = vrot.lane.b32.xlu0 %v1026_v0, %s1898_s5  ;;  %v692_v41 = vstv %s2296_s16  ;;  %v2395_v0 = vmul.f32 %v686_v61, %v2038_v34  ;;  %v248_v61 = vsel %vm247_vm0, %v2066_v62, %v246_v12  ;;  %v311_v62 = vrot.slane %v2088_v15, 2  ;;  %s2700_s16 = sld [smem:[#allocation6 + $0x18]] }
  0xe1   :  { %v2408_v54 = vmul.f32 %v692_v41, %v2038_v34  ;;  %v293_v5 = vsel %vm247_vm0, %v2080_v9, %v292_v38  ;;  %v284_v9 = vsel %vm247_vm0, %v2082_v11, %v283_v7  ;;  %v330_v24 = vsel %vm302_vm1, %v2096_v21, %v329_v53 }
  0xe2   :  { %v2382_v56 = vpop.permute.xlu1 %510  ;;  %v2386_v39 = vpop.permute.xlu0 %501  ;;  %v312_v38 = vsel %vm302_vm1, %v2088_v15, %v311_v62  ;;  %v421_v7 = vrot.slane %v2181_v52, 2 }
  0xe3   :  { %3063 = vst [vmem:[#allocation22_spill] sm:$0xff] %v2382_v56  ;;  %3064 = vst [vmem:[#allocation23_spill] sm:$0xff] %v2386_v39  ;;  %v2404_v56 = vmul.f32 %v1225_v13, %v2313_v59  ;;  %v1243_v39 = vstv %s2325_s19  ;;  %v275_v13 = vsel %vm247_vm0, %v2072_v3, %v274_v14  ;;  %v347_v14 = vrot.slane %v2106_v27, 2  ;;  %s2724_s19 = sld [smem:[#allocation6 + $0x84]] }
  0xe4   :  { %1055 = vrot.lane.b32.xlu1 %v2277_v43, %s1898_s5  ;;  %3067 = vst [vmem:[#allocation26_spill] sm:$0xff] %v2408_v54  ;;  %1046 = vrot.lane.b32.xlu0 %v2285_v44, %s1898_s5  ;;  %v2420_v43 = vmul.f32 %v689_v49, %v2038_v34  ;;  %v301_v44 = vrot.slane %v2090_v17, 2  ;;  %v320_v49 = vrot.slane %v2098_v23, 2  ;;  %v2436_v3 = vmul.f32 %v1243_v39, %v2313_v59 }
  0xe5   :  { %3066 = vst [vmem:[#allocation25_spill] sm:$0xff] %v2404_v56  ;;  %v250_v56 = vadd.f32 %v248_v61, %v2221_v4  ;;  %v277_v54 = vadd.f32 %v275_v13, %v2224_v6  ;;  %v366_v39 = vrot.slane %v2118_v33, 2  ;;  %v295_v4 = vadd.f32 %v293_v5, %v2259_v31 }
  0xe6   :  { %3069 = vst [vmem:[#allocation28_spill] sm:$0xff] %v2420_v43  ;;  %v2428_v12 = vpop.permute.xlu1 %529  ;;  %v2433_v41 = vpop.permute.xlu0 %519  ;;  %v268_v43 = vadd.f32 %v266_v58, %v2211_v63  ;;  %v303_v6 = vsel %vm302_vm1, %v2090_v17, %v301_v44  ;;  %v321_v11 = vsel %vm302_vm1, %v2098_v23, %v320_v49  ;;  %v348_v15 = vsel %vm302_vm1, %v2106_v27, %v347_v14 }
  0xe7   :  { %v356_v58 = vrot.slane %v2122_v36, 2  ;;  %v384_v61 = vrot.slane %v2131_v40, 2  ;;  %v375_v31 = vrot.slane %v2140_v42, 2  ;;  %v286_v17 = vadd.f32 %v284_v9, %v2262_v32 }
  0xe8   :  { %1073 = vrot.lane.b32.xlu1 %v2288_v45, %s1898_s5  ;;  %1064 = vrot.lane.b32.xlu0 %v2291_v47, %s1898_s5  ;;  %v338_v45 = vrot.slane %v2110_v29, 2  ;;  %v314_v21 = vadd.f32 %v312_v38, %v259_v30  ;;  %v402_v13 = vrot.slane %v2157_v46, 2  ;;  %v393_v23 = vrot.slane %v2162_v48, 2 }
  0xe9   :  { %v367_v60 = vsel %vm357_vm2, %v2118_v33, %v366_v39  ;;  %v305_v30 = vadd.f32 %v303_v6, %v250_v56  ;;  %v332_v62 = vadd.f32 %v330_v24, %v277_v54  ;;  %v323_v44 = vadd.f32 %v321_v11, %v268_v43 }
  0xea   :  { %v2457_v63 = vpop.permute.xlu1 %547  ;;  %v2466_v47 = vpop.permute.xlu0 %538  ;;  %v339_v27 = vsel %vm302_vm1, %v2110_v29, %v338_v45  ;;  %v350_v53 = vadd.f32 %v348_v15, %v295_v4  ;;  %v385_v29 = vsel %vm357_vm2, %v2131_v40, %v384_v61  ;;  %v376_v33 = vsel %vm357_vm2, %v2140_v42, %v375_v31  ;;  %v3070_v61 = vld [vmem:[#allocation17_spill] sm:$0xff] }
  0xeb   :  { %v439_v5 = vrot.slane %v2213_v1, 2  ;;  %v341_v56 = vadd.f32 %v339_v27, %v286_v17  ;;  %v369_v54 = vadd.f32 %v367_v60, %v314_v21  ;;  %v403_v43 = vsel %vm357_vm2, %v2157_v46, %v402_v13  ;;  %v3071_v17 = vld [vmem:[#allocation22_spill] sm:$0xff]  ;;  %v3072_v27 = vld [vmem:[#allocation23_spill] sm:$0xff] }
  0xec   :  { %1091 = vrot.lane.b32.xlu1 %v2301_v51, %s1899_s11  ;;  %1082 = vrot.lane.b32.xlu0 %v2320_v8, %s1899_s11  ;;  %v411_v51 = vrot.slane %v2189_v55, 2  ;;  %v358_v8 = vsel %vm357_vm2, %v2122_v36, %v356_v58  ;;  %v394_v36 = vsel %vm357_vm2, %v2162_v48, %v393_v23  ;;  %v422_v40 = vsel %vm412_vm3, %v2181_v52, %v421_v7 }
  0xed   :  { %v430_v14 = vrot.slane %v2228_v10, 2  ;;  %v360_v38 = vadd.f32 %v358_v8, %v305_v30  ;;  %v387_v46 = vadd.f32 %v385_v29, %v332_v62  ;;  %v378_v45 = vadd.f32 %v376_v33, %v323_v44  ;;  %v3073_v62 = vld [vmem:[#allocation14_spill] sm:$0xff]  ;;  %v3074_v29 = vld [vmem:[#allocation15_spill] sm:$0xff] }
  0xee   :  { %v2486_v32 = vpop.permute.xlu1 %565  ;;  %v2488_v49 = vpop.permute.xlu0 %556  ;;  %v413_v42 = vsel %vm412_vm3, %v2189_v55, %v411_v51  ;;  %v448_v48 = vrot.slane %v2264_v35, 2  ;;  %v405_v4 = vadd.f32 %v403_v43, %v350_v53  ;;  %v476_v52 = vrot.slane %v2298_v50, 2 }
  0xef   :  { %v466_v55 = vrot.slane %v2310_v57, 2  ;;  %v396_v6 = vadd.f32 %v394_v36, %v341_v56  ;;  %v424_v24 = vadd.f32 %v422_v40, %v369_v54  ;;  %v415_v11 = vadd.f32 %v413_v42, %v360_v38 }
  0xf0   :  { %1109 = vrot.lane.b32.xlu1 %v2329_v16, %s1899_s11  ;;  %1100 = vrot.lane.b32.xlu0 %v2332_v18, %s1899_s11  ;;  %v457_v16 = vrot.slane %v2253_v25, 2  ;;  %v440_v18 = vsel %vm412_vm3, %v2213_v1, %v439_v5  ;;  %v494_v15 = vrot.slane %v2338_v22, 2  ;;  %v431_v58 = vsel %vm412_vm3, %v2228_v10, %v430_v14 }
  0xf1   :  { %v485_v31 = vrot.slane %v3070_v61, 2  ;;  %v512_v21 = vrot.slane %v3071_v17, 2  ;;  %v449_v23 = vsel %vm412_vm3, %v2264_v35, %v448_v48  ;;  %v503_v60 = vrot.slane %v3072_v27, 2 }
  0xf2   :  { %v585_v9 = vpop.permute.xlu1 %584  ;;  %v575_v39 = vpop.permute.xlu0 %574  ;;  %v458_v1 = vsel %vm412_vm3, %v2253_v25, %v457_v16  ;;  %v477_v10 = vsel %vm467_vm4, %v2298_v50, %v476_v52  ;;  %v468_v25 = vsel %vm467_vm4, %v2310_v57, %v466_v55  ;;  %v521_v51 = vrot.slane %v2433_v41, 2 }
  0xf3   :  { %v549_v30 = vrot.slane %v2457_v63, 2  ;;  %v433_v44 = vadd.f32 %v431_v58, %v378_v45  ;;  %v460_v35 = vadd.f32 %v458_v1, %v405_v4  ;;  %v495_v53 = vsel %vm467_vm4, %v2338_v22, %v494_v15 }
  0xf4   :  { %1127 = vrot.lane.b32.xlu1 %v2335_v19, %s1899_s11  ;;  %1118 = vrot.lane.b32.xlu0 %v2341_v26, %s1899_s11  ;;  %v442_v19 = vadd.f32 %v440_v18, %v387_v46  ;;  %v531_v26 = vrot.slane %v2428_v12, 2  ;;  %v586_v8 = vrot.slane %v585_v9, 2  ;;  %v451_v50 = vadd.f32 %v449_v23, %v396_v6  ;;  %v3075_v46 = vld [vmem:[#allocation16_spill] sm:$0xff] }
  0xf5   :  { %v486_v57 = vsel %vm467_vm4, %v3070_v61, %v485_v31  ;;  %v513_v33 = vsel %vm467_vm4, %v3071_v17, %v512_v21  ;;  %v576_v5 = vrot.slane %v575_v39, 2  ;;  %v479_v54 = vadd.f32 %v477_v10, %v424_v24  ;;  %v3077_v21 = vld [vmem:[#allocation19_spill] sm:$0xff] }
  0xf6   :  { %v603_v13 = vpop.permute.xlu1 %602  ;;  %v594_v7 = vpop.permute.xlu0 %593  ;;  %v470_v43 = vadd.f32 %v468_v25, %v415_v11  ;;  %v504_v36 = vsel %vm467_vm4, %v3072_v27, %v503_v60  ;;  %v532_v22 = vsel %vm522_vm5, %v2428_v12, %v531_v26  ;;  %v497_v42 = vadd.f32 %v495_v53, %v442_v19  ;;  %v3076_v12 = vld [vmem:[#allocation18_spill] sm:$0xff]  ;;  %v3078_v60 = vld [vmem:[#allocation20_spill] sm:$0xff] }
  0xf7   :  { %v523_v14 = vsel %vm522_vm5, %v2433_v41, %v521_v51  ;;  %v550_v16 = vsel %vm522_vm5, %v2457_v63, %v549_v30  ;;  %v540_v38 = vrot.slane %v2466_v47, 2  ;;  %v488_v45 = vadd.f32 %v486_v57, %v433_v44 }
  0xf8   :  { %1165 = vrot.lane.b32.xlu1 %v3073_v62, %s1892_s14  ;;  %1156 = vrot.lane.b32.xlu0 %v3074_v29, %s1892_s14  ;;  %v515_v48 = vadd.f32 %v513_v33, %v460_v35  ;;  %v587_v4 = vsel %vm577_vm6, %v585_v9, %v586_v8  ;;  %v604_v18 = vrot.slane %v603_v13, 2  ;;  %v506_v52 = vadd.f32 %v504_v36, %v451_v50 }
  0xf9   :  { %v534_v55 = vadd.f32 %v532_v22, %v479_v54  ;;  %v578_v41 = vsel %vm577_vm6, %v575_v39, %v576_v5  ;;  %v595_v6 = vrot.slane %v594_v7, 2  ;;  %v525_v63 = vadd.f32 %v523_v14, %v470_v43 }
  0xfa   :  { %v621_v56 = vpop.permute.xlu1 %620  ;;  %v612_v40 = vpop.permute.xlu0 %611  ;;  %v552_v11 = vadd.f32 %v550_v16, %v497_v42  ;;  %v567_v15 = vrot.slane %v2486_v32, 2  ;;  %v541_v61 = vsel %vm522_vm5, %v2466_v47, %v540_v38  ;;  %v558_v9 = vrot.slane %v2488_v49, 2  ;;  %v3080_v38 = vld [vmem:[#allocation24_spill] sm:$0xff] }
  0xfb   :  { %v589_v31 = vadd.f32 %v587_v4, %v534_v55  ;;  %v580_v19 = vadd.f32 %v578_v41, %v525_v63  ;;  %v605_v39 = vsel %vm577_vm6, %v603_v13, %v604_v18  ;;  %v622_v23 = vrot.slane %v621_v56, 2  ;;  %v3082_v18 = vld [vmem:[#allocation25_spill] sm:$0xff] }
  0xfc   :  { %1183 = vrot.lane.b32.xlu1 %v3075_v46, %s1892_s14  ;;  %1174 = vrot.lane.b32.xlu0 %v3076_v12, %s1892_s14  ;;  %v596_v47 = vsel %vm577_vm6, %v594_v7, %v595_v6  ;;  %v613_v26 = vrot.slane %v612_v40, 2  ;;  %v543_v30 = vadd.f32 %v541_v61, %v488_v45  ;;  %v568_v13 = vsel %vm522_vm5, %v2486_v32, %v567_v15  ;;  %v3079_v7 = vld [vmem:[#allocation21_spill] sm:$0xff]  ;;  %v3083_v12 = vld [vmem:[#allocation28_spill] sm:$0xff]  ;;  %v3084_v15 = vld [vmem:[#allocation27_spill] sm:$0xff] }
  0xfd   :  { %v559_v53 = vsel %vm522_vm5, %v2488_v49, %v558_v9  ;;  %v607_v8 = vadd.f32 %v605_v39, %v552_v11  ;;  %v623_v33 = vsel %vm577_vm6, %v621_v56, %v622_v23  ;;  %v570_v49 = vadd.f32 %v568_v13, %v515_v48 }
  0xfe   :  { %v640_v24 = vpop.permute.xlu1 %639  ;;  %v630_v1 = vpop.permute.xlu0 %629  ;;  %v598_v57 = vadd.f32 %v596_v47, %v543_v30  ;;  %v614_v54 = vsel %vm577_vm6, %v612_v40, %v613_v26  ;;  %v561_v56 = vadd.f32 %v559_v53, %v506_v52  ;;  %v3081_v40 = vld [vmem:[#allocation26_spill] sm:$0xff]  ;;  %v696_v45 = vmul.f32 %v695_v2, %v2038_v34 }
  0xff   :  { %v641_v58 = vrot.slane %v640_v24, 2  ;;  %v631_v17 = vrot.slane %v630_v1, 2  ;;  %v1270_v55 = vstv %s2572_s20  ;;  %v1279_v23 = vstv %s2594_s24  ;;  %s2748_s20 = sld [smem:[#allocation6 + $0x4f]]  ;;  %s2768_s24 = sld [smem:[#allocation6 + $0x35]] }
 0x100   :  { %1201 = vrot.lane.b32.xlu1 %v3077_v21, %s1892_s14  ;;  %1192 = vrot.lane.b32.xlu0 %v3078_v60, %s1892_s14  ;;  %s2590_s14 = sld [smem:[#allocation6 + $0x66]]  ;;  %v616_v48 = vadd.f32 %v614_v54, %v561_v56  ;;  %v1315_v54 = vstv %s2628_s30 }
 0x101   :  { %v642_v27 = vsel %vm632_vm7, %v640_v24, %v641_v58  ;;  %v633_v25 = vsel %vm632_vm7, %v630_v1, %v631_v17  ;;  %v1261_v24 = vstv %s2576_s22  ;;  %v1271_v58 = vmul.f32 %v1270_v55, %v2313_v59  ;;  %s2756_s22 = sld [smem:[#allocation6 + $0xa0]]  ;;  %s2796_s30 = sld [smem:[#allocation6 + $0x86]] }
 0x102   :  { %v644_v10 = vadd.f32 %v642_v27, %v589_v31  ;;  %v658_v51 = vpop.permute.xlu1 %657  ;;  %v635_v62 = vadd.f32 %v633_v25, %v580_v19  ;;  %v649_v35 = vpop.permute.xlu0 %648  ;;  %v1262_v9 = vmul.f32 %v1261_v24, %v2313_v59  ;;  %v1280_v25 = vmul.f32 %v1279_v23, %v2313_v59 }
 0x103   :  { %v659_v44 = vrot.slane %v658_v51, 2  ;;  %v650_v29 = vrot.slane %v649_v35, 2  ;;  %v1360_v55 = vstv %s2648_s2  ;;  %v1351_v24 = vstv %s2652_s4  ;;  %s2840_s2 = sld [smem:[#allocation6 + $0x99]]  ;;  %s2843_s4 = sld [smem:[#allocation6 + $0x7e]] }
 0x104   :  { %1219 = vrot.lane.b32.xlu1 %v3079_v7, %s1893_s21  ;;  %v688_v50 = vadd.f32 %v2395_v0, %v644_v10  ;;  %1210 = vrot.lane.b32.xlu0 %v2389_v37, %s1893_s21  ;;  %v685_v32 = vadd.f32 %v2398_v28, %v635_v62  ;;  %v699_v28 = vmul.f32 %v698_v20, %v2038_v34 }
 0x105   :  { %v660_v5 = vsel %vm632_vm7, %v658_v51, %v659_v44  ;;  %v651_v0 = vsel %vm632_vm7, %v649_v35, %v650_v29  ;;  %v625_v37 = vadd.f32 %v623_v33, %v570_v49  ;;  %v1306_v51 = vstv %s2610_s26  ;;  %s2772_s26 = sld [smem:[#allocation6 + $0x1a]] }
 0x106   :  { %v662_v43 = vadd.f32 %v660_v5, %v607_v8  ;;  %v676_v36 = vpop.permute.xlu1 %675  ;;  %v653_v22 = vadd.f32 %v651_v0, %v598_v57  ;;  %v667_v14 = vpop.permute.xlu0 %666  ;;  %v1288_v17 = vstv %s2590_s14  ;;  %v1297_v44 = vstv %s2614_s27  ;;  %s2760_s14 = sld [smem:[#allocation6 + $0x85]]  ;;  %s2784_s27 = sld [smem:[#allocation6 + $0x50]] }
 0x107   :  { %v677_v42 = vrot.slane %v676_v36, 2  ;;  %v668_v16 = vrot.slane %v667_v14, 2  ;;  %v1307_v7 = vmul.f32 %v1306_v51, %v2313_v59  ;;  %v1298_v57 = vmul.f32 %v1297_v44, %v2313_v59 }
 0x108   :  { %1237 = vrot.lane.b32.xlu1 %v3080_v38, %s1893_s21  ;;  %v694_v46 = vadd.f32 %v3081_v40, %v662_v43  ;;  %1228 = vrot.lane.b32.xlu0 %v3082_v18, %s1893_s21  ;;  %v691_v52 = vadd.f32 %v3083_v12, %v653_v22  ;;  %v1324_v33 = vstv %s2624_s28  ;;  %v1333_v40 = vstv %s2640_s0  ;;  %s2792_s28 = sld [smem:[#allocation6 + $0xa1]]  ;;  %s2836_s0 = sld [smem:[#allocation6 + $0x48]] }
 0x109   :  { %v678_v4 = vsel %vm632_vm7, %v676_v36, %v677_v42  ;;  %v669_v41 = vsel %vm632_vm7, %v667_v14, %v668_v16  ;;  %v1325_v22 = vmul.f32 %v1324_v33, %v2313_v59  ;;  %v1316_v14 = vmul.f32 %v1315_v54, %v2313_v59 }
 0x10a   :  { %v680_v20 = vadd.f32 %v678_v4, %v625_v37  ;;  %v714_v6 = vpop.permute.xlu1 %713  ;;  %v671_v34 = vadd.f32 %v669_v41, %v616_v48  ;;  %v705_v63 = vpop.permute.xlu0 %704 }
 0x10b   :  { %v715_v2 = vrot.slane %v714_v6, 2  ;;  %v706_v11 = vrot.slane %v705_v63, 2 }
 0x10c   :  { %1255 = vrot.lane.b32.xlu1 %v3084_v15, %s1893_s21  ;;  %v700_v1 = vadd.f32 %v699_v28, %v680_v20  ;;  %1246 = vrot.lane.b32.xlu0 %v2436_v3, %s1893_s21  ;;  %v697_v31 = vadd.f32 %v696_v45, %v671_v34  ;;  %v1289_v3 = vmul.f32 %v1288_v17, %v2313_v59  ;;  %s2636_s21 = sld [smem:[#allocation6 + $0x67]] }
 0x10d   :  { %v716_v61 = vsel %vm247_vm0, %v714_v6, %v715_v2  ;;  %v707_v19 = vsel %vm247_vm0, %v705_v63, %v706_v11  ;;  %v1361_v15 = vmul.f32 %v1360_v55, %v2313_v59 }
 0x10e   :  { %v718_v21 = vadd.f32 %v716_v61, %v688_v50  ;;  %v732_v39 = vpop.permute.xlu1 %731  ;;  %v709_v27 = vadd.f32 %v707_v19, %v685_v32  ;;  %v723_v47 = vpop.permute.xlu0 %722  ;;  %v1378_v61 = vstv %s2660_s6  ;;  %s2891_s6 = sld [smem:[#allocation7 + $0x1]] }
 0x10f   :  { %v733_v60 = vrot.slane %v732_v39, 2  ;;  %v724_v26 = vrot.slane %v723_v47, 2 }
 0x110   :  { %1273 = vrot.lane.b32.xlu1 %v1271_v58, %s1894_s29  ;;  %1264 = vrot.lane.b32.xlu0 %v1262_v9, %s1894_s29 }
 0x111   :  { %v734_v10 = vsel %vm247_vm0, %v732_v39, %v733_v60  ;;  %v725_v13 = vsel %vm247_vm0, %v723_v47, %v724_v26  ;;  %v1379_v60 = vmul.f32 %v1378_v61, %v2313_v59 }
 0x112   :  { %v736_v30 = vadd.f32 %v734_v10, %v694_v46  ;;  %v750_v62 = vpop.permute.xlu1 %749  ;;  %v727_v35 = vadd.f32 %v725_v13, %v691_v52  ;;  %v741_v8 = vpop.permute.xlu0 %740  ;;  %v1342_v28 = vstv %s2636_s21  ;;  %v1334_v52 = vmul.f32 %v1333_v40, %v2313_v59  ;;  %s2833_s21 = sld [smem:[#allocation6 + $0x63]] }
 0x113   :  { %v751_v53 = vrot.slane %v750_v62, 2  ;;  %v742_v29 = vrot.slane %v741_v8, 2  ;;  %v1343_v18 = vmul.f32 %v1342_v28, %v2313_v59 }
 0x114   :  { %1291 = vrot.lane.b32.xlu1 %v1289_v3, %s1894_s29  ;;  %1282 = vrot.lane.b32.xlu0 %v1280_v25, %s1894_s29 }
 0x115   :  { %v752_v50 = vsel %vm247_vm0, %v750_v62, %v751_v53  ;;  %v743_v32 = vsel %vm247_vm0, %v741_v8, %v742_v29 }
 0x116   :  { %v754_v5 = vadd.f32 %v752_v50, %v700_v1  ;;  %v768_v49 = vpop.permute.xlu1 %767  ;;  %v745_v43 = vadd.f32 %v743_v32, %v697_v31  ;;  %v759_v36 = vpop.permute.xlu0 %758  ;;  %v1352_v1 = vmul.f32 %v1351_v24, %v2313_v59 }
 0x117   :  { %v769_v0 = vrot.slane %v768_v49, 2  ;;  %v760_v56 = vrot.slane %v759_v36, 2 }
 0x118   :  { %1309 = vrot.lane.b32.xlu1 %v1307_v7, %s1894_s29  ;;  %1300 = vrot.lane.b32.xlu0 %v1298_v57, %s1894_s29  ;;  %s2672_s29 = sld [smem:[#allocation6 + $0x68]]  ;;  %v1414_v7 = vstv %s2684_s10  ;;  %s2987_s10 = sld [smem:[#allocation7 + $0x5]] }
 0x119   :  { %v770_v42 = vsel %vm302_vm1, %v768_v49, %v769_v0  ;;  %v761_v16 = vsel %vm302_vm1, %v759_v36, %v760_v56  ;;  %v1415_v0 = vmul.f32 %v1414_v7, %v2313_v59 }
 0x11a   :  { %v772_v37 = vadd.f32 %v770_v42, %v718_v21  ;;  %v786_v38 = vpop.permute.xlu1 %785  ;;  %v763_v46 = vadd.f32 %v761_v16, %v709_v27  ;;  %v777_v48 = vpop.permute.xlu0 %776  ;;  %v1369_v21 = vstv %s2664_s7  ;;  %s2895_s7 = sld [smem:[#allocation7]] }
 0x11b   :  { %v787_v45 = vrot.slane %v786_v38, 2  ;;  %v778_v4 = vrot.slane %v777_v48, 2  ;;  %v1370_v26 = vmul.f32 %v1369_v21, %v2313_v59 }
 0x11c   :  { %1327 = vrot.lane.b32.xlu1 %v1325_v22, %s1895_s8  ;;  %1318 = vrot.lane.b32.xlu0 %v1316_v14, %s1895_s8  ;;  %v1432_v22 = vstv %s2696_s13  ;;  %s1900_s13 = smov [#allocation9]  }
 0x11d   :  { %v788_v12 = vsel %vm302_vm1, %v786_v38, %v787_v45  ;;  %v779_v41 = vsel %vm302_vm1, %v777_v48, %v778_v4  ;;  %v1433_v45 = vmul.f32 %v1432_v22, %v2313_v59 }
 0x11e   :  { %v790_v20 = vadd.f32 %v788_v12, %v736_v30  ;;  %v804_v6 = vpop.permute.xlu1 %803  ;;  %v781_v34 = vadd.f32 %v779_v41, %v727_v35  ;;  %v795_v63 = vpop.permute.xlu0 %794  ;;  %v1396_v3 = vstv %s2672_s29  ;;  %v1387_v30 = vstv %s2676_s9  ;;  %s2899_s29 = sld [smem:[#allocation7 + $0x3]]  ;;  %s2901_s9 = sld [smem:[#allocation7 + $0x2]] }
 0x11f   :  { %v805_v2 = vrot.slane %v804_v6, 2  ;;  %v796_v11 = vrot.slane %v795_v63, 2  ;;  %v1397_v53 = vmul.f32 %v1396_v3, %v2313_v59  ;;  %v1388_v29 = vmul.f32 %v1387_v30, %v2313_v59 }
 0x120   :  { %1345 = vrot.lane.b32.xlu1 %v1343_v18, %s1895_s8  ;;  %1336 = vrot.lane.b32.xlu0 %v1334_v52, %s1895_s8 }
 0x121   :  { %v806_v58 = vsel %vm302_vm1, %v804_v6, %v805_v2  ;;  %v797_v31 = vsel %vm302_vm1, %v795_v63, %v796_v11 }
 0x122   :  { %v808_v9 = vadd.f32 %v806_v58, %v754_v5  ;;  %v822_v17 = vpop.permute.xlu1 %821  ;;  %v799_v19 = vadd.f32 %v797_v31, %v745_v43  ;;  %v813_v23 = vpop.permute.xlu0 %812  ;;  %v1405_v5 = vstv %s2688_s12  ;;  %s2991_s12 = sld [smem:[#allocation7 + $0x4]] }
 0x123   :  { %v823_v39 = vrot.slane %v822_v17, 2  ;;  %v814_v27 = vrot.slane %v813_v23, 2  ;;  %v1406_v56 = vmul.f32 %v1405_v5, %v2313_v59 }
 0x124   :  { %1363 = vrot.lane.b32.xlu1 %v1361_v15, %s1895_s8  ;;  %1354 = vrot.lane.b32.xlu0 %v1352_v1, %s1895_s8  ;;  %s2708_s8 = sld [smem:[#allocation6 + $0x69]]  ;;  %v1468_v15 = vstv %s2720_s18 }
 0x125   :  { %v824_v47 = vsel %vm357_vm2, %v822_v17, %v823_v39  ;;  %v815_v25 = vsel %vm357_vm2, %v813_v23, %v814_v27  ;;  %v1469_v39 = vmul.f32 %v1468_v15, %v2313_v59 }
 0x126   :  { %v826_v10 = vadd.f32 %v824_v47, %v772_v37  ;;  %v840_v51 = vpop.permute.xlu1 %839  ;;  %v817_v13 = vadd.f32 %v815_v25, %v763_v46  ;;  %v831_v44 = vpop.permute.xlu0 %830  ;;  %v1423_v37 = vstv %s2700_s16  ;;  %s1616_s16 = sshll.u32 %s1900_s13, 4  ;;  %s1617_s16 = int_to_ptr.vmem [resolvable:$true] %s1616_s16 }
 0x127   :  { %v841_v62 = vrot.slane %v840_v51, 2  ;;  %v832_v35 = vrot.slane %v831_v44, 2  ;;  %v1424_v4 = vmul.f32 %v1423_v37, %v2313_v59  ;;  %p1862_p5 = scmp.lt.s32.totalorder %s1617_s16, %s1617_s16 }
 0x128   :  { %1381 = vrot.lane.b32.xlu1 %v1379_v60, %s1896_s15  ;;  %1372 = vrot.lane.b32.xlu0 %v1370_v26, %s1896_s15  ;;  %v1486_v60 = vstv %s2732_s1 }
 0x129   :  { %v842_v8 = vsel %vm357_vm2, %v840_v51, %v841_v62  ;;  %v833_v57 = vsel %vm357_vm2, %v831_v44, %v832_v35  ;;  %v1487_v62 = vmul.f32 %v1486_v60, %v2313_v59 }
 0x12a   :  { %v844_v50 = vadd.f32 %v842_v8, %v790_v20  ;;  %v858_v33 = vpop.permute.xlu1 %857  ;;  %v835_v32 = vadd.f32 %v833_v57, %v781_v34  ;;  %v849_v54 = vpop.permute.xlu0 %848  ;;  %v1450_v18 = vstv %s2708_s8  ;;  %v1441_v20 = vstv %s2712_s17  ;;  %s1857_s8 = scalar_lea.vmem %s1617_s16, 384 }
 0x12b   :  { %v859_v49 = vrot.slane %v858_v33, 2  ;;  %v850_v43 = vrot.slane %v849_v54, 2  ;;  %v1451_v2 = vmul.f32 %v1450_v18, %v2313_v59  ;;  %v1442_v11 = vmul.f32 %v1441_v20, %v2313_v59  ;;  %p1858_p4 = scmp.ne.s32.totalorder %s1617_s16, %s1857_s8  ;;  %p1863_p6 = scmp.lt.s32.totalorder %s1857_s8, %s1857_s8 }
 0x12c   :  { %1399 = vrot.lane.b32.xlu1 %v1397_v53, %s1896_s15  ;;  %1390 = vrot.lane.b32.xlu0 %v1388_v29, %s1896_s15 }
 0x12d   :  { %v860_v36 = vsel %vm357_vm2, %v858_v33, %v859_v49  ;;  %v851_v14 = vsel %vm357_vm2, %v849_v54, %v850_v43  ;;  %p1864_p7 = por %p1863_p6, %p1862_p5 }
 0x12e   :  { %v862_v42 = vadd.f32 %v860_v36, %v808_v9  ;;  %v876_v28 = vpop.permute.xlu1 %875  ;;  %v853_v16 = vadd.f32 %v851_v14, %v799_v19  ;;  %v867_v40 = vpop.permute.xlu0 %866  ;;  %v1459_v9 = vstv %s2724_s19 }
 0x12f   :  { %v877_v38 = vrot.slane %v876_v28, 2  ;;  %v868_v46 = vrot.slane %v867_v40, 2  ;;  %v1460_v27 = vmul.f32 %v1459_v9, %v2313_v59  ;;  %p1865_p8 = pnand %p1864_p7, %p1858_p4 }
 0x130   :  { %1417 = vrot.lane.b32.xlu1 %v1415_v0, %s1896_s15  ;;  %1408 = vrot.lane.b32.xlu0 %v1406_v56, %s1896_s15  ;;  %s2744_s15 = sld [smem:[#allocation6 + $0x6a]]  ;;  %v1522_v0 = vstv %s2756_s22 }
 0x131   :  { %v878_v48 = vsel %vm412_vm3, %v876_v28, %v877_v38  ;;  %v869_v52 = vsel %vm412_vm3, %v867_v40, %v868_v46  ;;  %v1523_v38 = vmul.f32 %v1522_v0, %v2313_v59 }
 0x132   :  { %v880_v12 = vadd.f32 %v878_v48, %v826_v10  ;;  %v894_v55 = vpop.permute.xlu1 %893  ;;  %v871_v41 = vadd.f32 %v869_v52, %v817_v13  ;;  %v885_v24 = vpop.permute.xlu0 %884  ;;  %v1477_v10 = vstv %s2736_s25 }
 0x133   :  { %v895_v6 = vrot.slane %v894_v55, 2  ;;  %v886_v34 = vrot.slane %v885_v24, 2  ;;  %v1478_v35 = vmul.f32 %v1477_v10, %v2313_v59 }
 0x134   :  { %1435 = vrot.lane.b32.xlu1 %v1433_v45, %s1897_s23  ;;  %1426 = vrot.lane.b32.xlu0 %v1424_v4, %s1897_s23  ;;  %v1540_v45 = vstv %s2768_s24 }
 0x135   :  { %v896_v63 = vsel %vm412_vm3, %v894_v55, %v895_v6  ;;  %v887_v1 = vsel %vm412_vm3, %v885_v24, %v886_v34  ;;  %v1541_v6 = vmul.f32 %v1540_v45, %v2313_v59 }
 0x136   :  { %v898_v58 = vadd.f32 %v896_v63, %v844_v50  ;;  %v912_v61 = vpop.permute.xlu1 %911  ;;  %v889_v31 = vadd.f32 %v887_v1, %v835_v32  ;;  %v903_v21 = vpop.permute.xlu0 %902  ;;  %v1504_v53 = vstv %s2744_s15  ;;  %v1495_v50 = vstv %s2748_s20 }
 0x137   :  { %v913_v17 = vrot.slane %v912_v61, 2  ;;  %v904_v19 = vrot.slane %v903_v21, 2  ;;  %v1505_v49 = vmul.f32 %v1504_v53, %v2313_v59  ;;  %v1496_v43 = vmul.f32 %v1495_v50, %v2313_v59 }
 0x138   :  { %1453 = vrot.lane.b32.xlu1 %v1451_v2, %s1897_s23  ;;  %1444 = vrot.lane.b32.xlu0 %v1442_v11, %s1897_s23 }
 0x139   :  { %v914_v23 = vsel %vm412_vm3, %v912_v61, %v913_v17  ;;  %v905_v26 = vsel %vm412_vm3, %v903_v21, %v904_v19  ;;  %v2807_v17 = vld [vmem:[#allocation2 + $0x8] sm:$0xf] }
 0x13a   :  { %v916_v47 = vadd.f32 %v914_v23, %v862_v42  ;;  %v930_v3 = vpop.permute.xlu1 %929  ;;  %v907_v25 = vadd.f32 %v905_v26, %v853_v16  ;;  %v921_v30 = vpop.permute.xlu0 %920  ;;  %v1513_v42 = vstv %s2760_s14 }
 0x13b   :  { %v931_v51 = vrot.slane %v930_v3, 2  ;;  %v922_v13 = vrot.slane %v921_v30, 2  ;;  %v1514_v46 = vmul.f32 %v1513_v42, %v2313_v59 }
 0x13c   :  { %1471 = vrot.lane.b32.xlu1 %v1469_v39, %s1897_s23  ;;  %1462 = vrot.lane.b32.xlu0 %v1460_v27, %s1897_s23  ;;  %s2780_s23 = sld [smem:[#allocation6 + $0x6b]]  ;;  %v1576_v39 = vstv %s2792_s28 }
 0x13d   :  { %v932_v44 = vsel %vm467_vm4, %v930_v3, %v931_v51  ;;  %v923_v29 = vsel %vm467_vm4, %v921_v30, %v922_v13  ;;  %v1577_v51 = vmul.f32 %v2807_v17, %v1576_v39 }
 0x13e   :  { %v934_v8 = vadd.f32 %v932_v44, %v880_v12  ;;  %v948_v7 = vpop.permute.xlu1 %947  ;;  %v925_v57 = vadd.f32 %v923_v29, %v871_v41  ;;  %v939_v5 = vpop.permute.xlu0 %938  ;;  %v1531_v12 = vstv %s2772_s26 }
 0x13f   :  { %v949_v33 = vrot.slane %v948_v7, 2  ;;  %v940_v32 = vrot.slane %v939_v5, 2  ;;  %v1532_v34 = vmul.f32 %v1531_v12, %v2313_v59 }
 0x140   :  { %1489 = vrot.lane.b32.xlu1 %v1487_v62, %s1898_s5  ;;  %1480 = vrot.lane.b32.xlu0 %v1478_v35, %s1898_s5 }
 0x141   :  { %v950_v54 = vsel %vm467_vm4, %v948_v7, %v949_v33  ;;  %v941_v56 = vsel %vm467_vm4, %v939_v5, %v940_v32 }
 0x142   :  { %v952_v36 = vadd.f32 %v950_v54, %v898_v58  ;;  %v966_v22 = vpop.permute.xlu1 %965  ;;  %v943_v14 = vadd.f32 %v941_v56, %v889_v31  ;;  %v957_v37 = vpop.permute.xlu0 %956  ;;  %v1558_v2 = vstv %s2780_s23  ;;  %v1549_v58 = vstv %s2784_s27 }
 0x143   :  { %v967_v28 = vrot.slane %v966_v22, 2  ;;  %v958_v16 = vrot.slane %v957_v37, 2  ;;  %v1559_v21 = vmul.f32 %v2807_v17, %v1558_v2  ;;  %v1550_v19 = vmul.f32 %v2807_v17, %v1549_v58 }
 0x144   :  { %1507 = vrot.lane.b32.xlu1 %v1505_v49, %s1898_s5  ;;  %1498 = vrot.lane.b32.xlu0 %v1496_v43, %s1898_s5 }
 0x145   :  { %v968_v40 = vsel %vm467_vm4, %v966_v22, %v967_v28  ;;  %v959_v4 = vsel %vm467_vm4, %v957_v37, %v958_v16 }
 0x146   :  { %v970_v48 = vadd.f32 %v968_v40, %v916_v47  ;;  %v984_v18 = vpop.permute.xlu1 %983  ;;  %v961_v52 = vadd.f32 %v959_v4, %v907_v25  ;;  %v975_v20 = vpop.permute.xlu0 %974  ;;  %v1567_v47 = vstv %s2796_s30 }
 0x147   :  { %v985_v55 = vrot.slane %v984_v18, 2  ;;  %v976_v41 = vrot.slane %v975_v20, 2  ;;  %v1568_v13 = vmul.f32 %v2807_v17, %v1567_v47 }
 0x148   :  { %1525 = vrot.lane.b32.xlu1 %v1523_v38, %s1898_s5  ;;  %1516 = vrot.lane.b32.xlu0 %v1514_v46, %s1898_s5  ;;  %s2829_s5 = sld [smem:[#allocation6 + $0x2d]] }
 0x149   :  { %v986_v24 = vsel %vm522_vm5, %v984_v18, %v985_v55  ;;  %v977_v11 = vsel %vm522_vm5, %v975_v20, %v976_v41 }
 0x14a   :  { %v988_v63 = vadd.f32 %v986_v24, %v934_v8  ;;  %v1002_v15 = vpop.permute.xlu1 %1001  ;;  %v979_v1 = vadd.f32 %v977_v11, %v925_v57  ;;  %v993_v9 = vpop.permute.xlu0 %992 }
 0x14b   :  { %v1003_v61 = vrot.slane %v1002_v15, 2  ;;  %v994_v31 = vrot.slane %v993_v9, 2 }
 0x14c   :  { %1543 = vrot.lane.b32.xlu1 %v1541_v6, %s1899_s11  ;;  %1534 = vrot.lane.b32.xlu0 %v1532_v34, %s1899_s11 }
 0x14d   :  { %v1004_v59 = vsel %vm522_vm5, %v1002_v15, %v1003_v61  ;;  %v995_v27 = vsel %vm522_vm5, %v993_v9, %v994_v31 }
 0x14e   :  { %v1006_v23 = vadd.f32 %v1004_v59, %v952_v36  ;;  %v1020_v60 = vpop.permute.xlu1 %1019  ;;  %v997_v26 = vadd.f32 %v995_v27, %v943_v14  ;;  %v1011_v10 = vpop.permute.xlu0 %1010 }
 0x14f   :  { %v1021_v3 = vrot.slane %v1020_v60, 2  ;;  %v1012_v25 = vrot.slane %v1011_v10, 2 }
 0x150   :  { %1561 = vrot.lane.b32.xlu1 %v1559_v21, %s1899_s11  ;;  %1552 = vrot.lane.b32.xlu0 %v1550_v19, %s1899_s11 }
 0x151   :  { %v1022_v30 = vsel %vm522_vm5, %v1020_v60, %v1021_v3  ;;  %v1013_v44 = vsel %vm522_vm5, %v1011_v10, %v1012_v25 }
 0x152   :  { %v1024_v62 = vadd.f32 %v1022_v30, %v970_v48  ;;  %v1038_v35 = vpop.permute.xlu1 %1037  ;;  %v1015_v53 = vadd.f32 %v1013_v44, %v961_v52  ;;  %v1029_v29 = vpop.permute.xlu0 %1028 }
 0x153   :  { %v1039_v8 = vrot.slane %v1038_v35, 2  ;;  %v1030_v7 = vrot.slane %v1029_v29, 2 }
 0x154   :  { %1579 = vrot.lane.b32.xlu1 %v1577_v51, %s1899_s11  ;;  %1570 = vrot.lane.b32.xlu0 %v1568_v13, %s1899_s11  ;;  %s1647_s11 = sld [smem:[#allocation6 + $0x12]] }
 0x155   :  { %v1040_v50 = vsel %vm577_vm6, %v1038_v35, %v1039_v8  ;;  %v1031_v33 = vsel %vm577_vm6, %v1029_v29, %v1030_v7 }
 0x156   :  { %v1042_v57 = vadd.f32 %v1040_v50, %v988_v63  ;;  %v1056_v5 = vpop.permute.xlu1 %1055  ;;  %v1033_v32 = vadd.f32 %v1031_v33, %v979_v1  ;;  %v1047_v54 = vpop.permute.xlu0 %1046  ;;  %v1138_v63 = vstv %s2829_s5  ;;  %v1147_v50 = vstv %s2843_s4 }
 0x157   :  { %v1057_v49 = vrot.slane %v1056_v5, 2  ;;  %v1048_v43 = vrot.slane %v1047_v54, 2  ;;  %v1139_v59 = vmul.f32 %v2807_v17, %v1138_v63 }
 0x159   :  { %v1058_v0 = vsel %vm577_vm6, %v1056_v5, %v1057_v49  ;;  %v1049_v56 = vsel %vm577_vm6, %v1047_v54, %v1048_v43 }
 0x15a   :  { %v1060_v36 = vadd.f32 %v1058_v0, %v1006_v23  ;;  %v1074_v22 = vpop.permute.xlu1 %1073  ;;  %v1051_v42 = vadd.f32 %v1049_v56, %v997_v26  ;;  %v1065_v28 = vpop.permute.xlu0 %1064  ;;  %v1135_v1 = vstv %s1647_s11  ;;  %v1144_v23 = vstv %s2833_s21 }
 0x15b   :  { %v1075_v14 = vrot.slane %v1074_v22, 2  ;;  %v1066_v37 = vrot.slane %v1065_v28, 2  ;;  %v1136_v39 = vmul.f32 %v2807_v17, %v1135_v1  ;;  %v1141_v26 = vstv %s2836_s0 }
 0x15c   :  { %v1145_v13 = vmul.f32 %v2807_v17, %v1144_v23  ;;  %v1142_v35 = vmul.f32 %v2807_v17, %v1141_v26 }
 0x15d   :  { %v1076_v16 = vsel %vm577_vm6, %v1074_v22, %v1075_v14  ;;  %v1067_v40 = vsel %vm577_vm6, %v1065_v28, %v1066_v37 }
 0x15e   :  { %v1078_v38 = vadd.f32 %v1076_v16, %v1024_v62  ;;  %v1092_v46 = vpop.permute.xlu1 %1091  ;;  %v1069_v45 = vadd.f32 %v1067_v40, %v1015_v53  ;;  %v1083_v4 = vpop.permute.xlu0 %1082  ;;  %v1150_v53 = vstv %s2840_s2 }
 0x15f   :  { %v1093_v48 = vrot.slane %v1092_v46, 2  ;;  %v1084_v18 = vrot.slane %v1083_v4, 2  ;;  %v1151_v54 = vmul.f32 %v2807_v17, %v1150_v53 }
 0x161   :  { %v1094_v12 = vsel %vm632_vm7, %v1092_v46, %v1093_v48  ;;  %v1085_v55 = vsel %vm632_vm7, %v1083_v4, %v1084_v18 }
 0x162   :  { %v1096_v52 = vadd.f32 %v1094_v12, %v1042_v57  ;;  %v1110_v20 = vpop.permute.xlu1 %1109  ;;  %v1087_v41 = vadd.f32 %v1085_v55, %v1033_v32  ;;  %v1101_v24 = vpop.permute.xlu0 %1100 }
 0x163   :  { %v1111_v6 = vrot.slane %v1110_v20, 2  ;;  %v1102_v34 = vrot.slane %v1101_v24, 2 }
 0x164   :  { %v1140_v51 = vadd.f32 %v1139_v59, %v1096_v52  ;;  %v1137_v44 = vadd.f32 %v1136_v39, %v1087_v41 }
 0x165   :  { %v1112_v2 = vsel %vm632_vm7, %v1110_v20, %v1111_v6  ;;  %v1103_v15 = vsel %vm632_vm7, %v1101_v24, %v1102_v34 }
 0x166   :  { %v1114_v11 = vadd.f32 %v1112_v2, %v1060_v36  ;;  %v1128_v58 = vpop.permute.xlu1 %1127  ;;  %v1105_v61 = vadd.f32 %v1103_v15, %v1051_v42  ;;  %v1119_v31 = vpop.permute.xlu0 %1118  ;;  %v1148_v36 = vmul.f32 %v2807_v17, %v1147_v50 }
 0x167   :  { %v1129_v9 = vrot.slane %v1128_v58, 2  ;;  %v1120_v21 = vrot.slane %v1119_v31, 2 }
 0x168   :  { %v1146_v32 = vadd.f32 %v1145_v13, %v1114_v11  ;;  %v1143_v0 = vadd.f32 %v1142_v35, %v1105_v61  ;;  %v1585_v35 = vstv %s2895_s7 }
 0x169   :  { %v1130_v19 = vsel %vm632_vm7, %v1128_v58, %v1129_v9  ;;  %v1121_v60 = vsel %vm632_vm7, %v1119_v31, %v1120_v21 }
 0x16a   :  { %v1132_v27 = vadd.f32 %v1130_v19, %v1078_v38  ;;  %v1166_v47 = vpop.permute.xlu1 %1165  ;;  %v1123_v3 = vadd.f32 %v1121_v60, %v1069_v45  ;;  %v1157_v25 = vpop.permute.xlu0 %1156 }
 0x16b   :  { %v1167_v10 = vrot.slane %v1166_v47, 2  ;;  %v1158_v30 = vrot.slane %v1157_v25, 2 }
 0x16c   :  { %v1152_v16 = vadd.f32 %v1151_v54, %v1132_v27  ;;  %v1149_v46 = vadd.f32 %v1148_v36, %v1123_v3 }
 0x16d   :  { %v1168_v62 = vsel %vm247_vm0, %v1166_v47, %v1167_v10  ;;  %v1159_v29 = vsel %vm247_vm0, %v1157_v25, %v1158_v30 }
 0x16e   :  { %v2855_v8 = vadd.f32 %v1168_v62, %v1140_v51  ;;  %v1184_v7 = vpop.permute.xlu1 %1183  ;;  %v2859_v57 = vadd.f32 %v1159_v29, %v1137_v44  ;;  %v1175_v5 = vpop.permute.xlu0 %1174  ;;  %v1591_v51 = vstv %s2891_s6 }
 0x16f   :  { %v1185_v33 = vrot.slane %v1184_v7, 2  ;;  %v1176_v49 = vrot.slane %v1175_v5, 2 }
 0x171   :  { %v1186_v43 = vsel %vm247_vm0, %v1184_v7, %v1185_v33  ;;  %v1177_v22 = vsel %vm247_vm0, %v1175_v5, %v1176_v49  ;;  %v1599_v33 = vstv %s2899_s29 }
 0x172   :  { %v2864_v56 = vadd.f32 %v1186_v43, %v1146_v32  ;;  %v1202_v42 = vpop.permute.xlu1 %1201  ;;  %v2867_v14 = vadd.f32 %v1177_v22, %v1143_v0  ;;  %v1193_v37 = vpop.permute.xlu0 %1192  ;;  %v1595_v22 = vstv %s2901_s9 }
 0x173   :  { %v1203_v28 = vrot.slane %v1202_v42, 2  ;;  %v1194_v38 = vrot.slane %v1193_v37, 2 }
 0x175   :  { %v1204_v40 = vsel %vm247_vm0, %v1202_v42, %v1203_v28  ;;  %v1195_v48 = vsel %vm247_vm0, %v1193_v37, %v1194_v38 }
 0x176   :  { %v2870_v45 = vadd.f32 %v1204_v40, %v1152_v16  ;;  %v1220_v4 = vpop.permute.xlu1 %1219  ;;  %v2873_v17 = vadd.f32 %v1195_v48, %v1149_v46  ;;  %v1211_v18 = vpop.permute.xlu0 %1210 }
 0x177   :  { %v1221_v27 = vrot.slane %v1220_v4, 2  ;;  %v1212_v47 = vrot.slane %v1211_v18, 2 }
 0x179   :  { %v1222_v30 = vsel %vm302_vm1, %v1220_v4, %v1221_v27  ;;  %v1213_v53 = vsel %vm302_vm1, %v1211_v18, %v1212_v47 }
 0x17a   :  { %v1238_v12 = vpop.permute.xlu1 %1237  ;;  %v1229_v52 = vpop.permute.xlu0 %1228  ;;  %v1224_v43 = vadd.f32 %v1222_v30, %v2855_v8  ;;  %v1215_v40 = vadd.f32 %v1213_v53, %v2859_v57 }
 0x17b   :  { %v1239_v26 = vrot.slane %v1238_v12, 2  ;;  %v1230_v3 = vrot.slane %v1229_v52, 2 }
 0x17d   :  { %v1240_v29 = vsel %vm302_vm1, %v1238_v12, %v1239_v26  ;;  %v1231_v7 = vsel %vm302_vm1, %v1229_v52, %v1230_v3 }
 0x17e   :  { %v1256_v55 = vpop.permute.xlu1 %1255  ;;  %v1247_v20 = vpop.permute.xlu0 %1246  ;;  %v1242_v46 = vadd.f32 %v1240_v29, %v2864_v56  ;;  %v1233_v48 = vadd.f32 %v1231_v7, %v2867_v14 }
 0x17f   :  { %v1257_v25 = vrot.slane %v1256_v55, 2  ;;  %v1248_v13 = vrot.slane %v1247_v20, 2 }
 0x181   :  { %v1258_v5 = vsel %vm302_vm1, %v1256_v55, %v1257_v25  ;;  %v1249_v42 = vsel %vm302_vm1, %v1247_v20, %v1248_v13 }
 0x182   :  { %v1274_v41 = vpop.permute.xlu1 %1273  ;;  %v1265_v6 = vpop.permute.xlu0 %1264  ;;  %v1260_v4 = vadd.f32 %v1258_v5, %v2870_v45  ;;  %v1251_v20 = vadd.f32 %v1249_v42, %v2873_v17 }
 0x183   :  { %v1275_v62 = vrot.slane %v1274_v41, 2  ;;  %v1266_v32 = vrot.slane %v1265_v6, 2 }
 0x185   :  { %v1276_v28 = vsel %vm357_vm2, %v1274_v41, %v1275_v62  ;;  %v1267_v18 = vsel %vm357_vm2, %v1265_v6, %v1266_v32 }
 0x186   :  { %v1292_v24 = vpop.permute.xlu1 %1291  ;;  %v1283_v34 = vpop.permute.xlu0 %1282  ;;  %v1278_v41 = vadd.f32 %v1276_v28, %v1224_v43  ;;  %v1269_v47 = vadd.f32 %v1267_v18, %v1215_v40 }
 0x187   :  { %v1293_v49 = vrot.slane %v1292_v24, 2  ;;  %v1284_v54 = vrot.slane %v1283_v34, 2 }
 0x189   :  { %v1294_v12 = vsel %vm357_vm2, %v1292_v24, %v1293_v49  ;;  %v1285_v52 = vsel %vm357_vm2, %v1283_v34, %v1284_v54 }
 0x18a   :  { %v1310_v2 = vpop.permute.xlu1 %1309  ;;  %v1301_v63 = vpop.permute.xlu0 %1300  ;;  %v1296_v34 = vadd.f32 %v1294_v12, %v1242_v46  ;;  %v1287_v26 = vadd.f32 %v1285_v52, %v1233_v48 }
 0x18b   :  { %v1311_v0 = vrot.slane %v1310_v2, 2  ;;  %v1302_v36 = vrot.slane %v1301_v63, 2 }
 0x18d   :  { %v1312_v57 = vsel %vm357_vm2, %v1310_v2, %v1311_v0  ;;  %v1303_v56 = vsel %vm357_vm2, %v1301_v63, %v1302_v36 }
 0x18e   :  { %v1328_v11 = vpop.permute.xlu1 %1327  ;;  %v1319_v15 = vpop.permute.xlu0 %1318  ;;  %v1314_v25 = vadd.f32 %v1312_v57, %v1260_v4 }
 0x18f   :  { %v1329_v37 = vrot.slane %v1328_v11, 2  ;;  %v1320_v16 = vrot.slane %v1319_v15, 2 }
 0x191   :  { %v1330_v14 = vsel %vm412_vm3, %v1328_v11, %v1329_v37  ;;  %v1321_v45 = vsel %vm412_vm3, %v1319_v15, %v1320_v16  ;;  %v1305_v15 = vadd.f32 %v1303_v56, %v1251_v20 }
 0x192   :  { %v2875_v58 = vpop.permute.xlu1 %1345  ;;  %v2877_v1 = vpop.permute.xlu0 %1336  ;;  %v1332_v30 = vadd.f32 %v1330_v14, %v1278_v41  ;;  %v1323_v13 = vadd.f32 %v1321_v45, %v1269_v47 }
 0x193   :  { %v1347_v55 = vrot.slane %v2875_v58, 2  ;;  %v1338_v27 = vrot.slane %v2877_v1, 2 }
 0x195   :  { %v1348_v2 = vsel %vm412_vm3, %v2875_v58, %v1347_v55  ;;  %v1339_v53 = vsel %vm412_vm3, %v2877_v1, %v1338_v27 }
 0x196   :  { %v2879_v61 = vpop.permute.xlu1 %1363  ;;  %v2881_v9 = vpop.permute.xlu0 %1354  ;;  %v1350_v32 = vadd.f32 %v1348_v2, %v1296_v34  ;;  %v1341_v28 = vadd.f32 %v1339_v53, %v1287_v26 }
 0x197   :  { %v1365_v6 = vrot.slane %v2879_v61, 2  ;;  %v1356_v3 = vrot.slane %v2881_v9, 2 }
 0x199   :  { %v1366_v29 = vsel %vm412_vm3, %v2879_v61, %v1365_v6  ;;  %v1357_v49 = vsel %vm412_vm3, %v2881_v9, %v1356_v3 }
 0x19a   :  { %v2883_v31 = vpop.permute.xlu1 %1381  ;;  %v2885_v21 = vpop.permute.xlu0 %1372  ;;  %v1368_v37 = vadd.f32 %v1366_v29, %v1314_v25  ;;  %v1359_v40 = vadd.f32 %v1357_v49, %v1305_v15 }
 0x19b   :  { %v1383_v63 = vrot.slane %v2883_v31, 2  ;;  %v1374_v11 = vrot.slane %v2885_v21, 2 }
 0x19d   :  { %v1384_v1 = vsel %vm467_vm4, %v2883_v31, %v1383_v63  ;;  %v1375_v61 = vsel %vm467_vm4, %v2885_v21, %v1374_v11 }
 0x19e   :  { %v2887_v59 = vpop.permute.xlu1 %1399  ;;  %v2889_v19 = vpop.permute.xlu0 %1390  ;;  %v1386_v4 = vadd.f32 %v1384_v1, %v1332_v30  ;;  %v1377_v18 = vadd.f32 %v1375_v61, %v1323_v13 }
 0x19f   :  { %v1401_v62 = vrot.slane %v2887_v59, 2  ;;  %v1392_v7 = vrot.slane %v2889_v19, 2 }
 0x1a1   :  { %v1402_v9 = vsel %vm467_vm4, %v2887_v59, %v1401_v62  ;;  %v1393_v46 = vsel %vm467_vm4, %v2889_v19, %v1392_v7 }
 0x1a2   :  { %v2893_v39 = vpop.permute.xlu1 %1417  ;;  %v2897_v23 = vpop.permute.xlu0 %1408  ;;  %v1404_v59 = vadd.f32 %v1402_v9, %v1350_v32  ;;  %v1395_v41 = vadd.f32 %v1393_v46, %v1341_v28 }
 0x1a3   :  { %v1419_v5 = vrot.slane %v2893_v39, 2  ;;  %v1410_v54 = vrot.slane %v2897_v23, 2 }
 0x1a5   :  { %v1420_v31 = vsel %vm467_vm4, %v2893_v39, %v1419_v5  ;;  %v1411_v12 = vsel %vm467_vm4, %v2897_v23, %v1410_v54 }
 0x1a6   :  { %v2903_v60 = vpop.permute.xlu1 %1435  ;;  %v2905_v10 = vpop.permute.xlu0 %1426  ;;  %v1422_v57 = vadd.f32 %v1420_v31, %v1368_v37  ;;  %v1413_v45 = vadd.f32 %v1411_v12, %v1359_v40  ;;  %v1607_v12 = vstv %s2987_s10 }
 0x1a7   :  { %v1437_v43 = vrot.slane %v2903_v60, 2  ;;  %v1428_v36 = vrot.slane %v2905_v10, 2 }
 0x1a9   :  { %v1438_v52 = vsel %vm522_vm5, %v2903_v60, %v1437_v43  ;;  %v1429_v20 = vsel %vm522_vm5, %v2905_v10, %v1428_v36 }
 0x1aa   :  { %v2909_v44 = vpop.permute.xlu1 %1453  ;;  %v2915_v50 = vpop.permute.xlu0 %1444  ;;  %v1440_v23 = vadd.f32 %v1438_v52, %v1386_v4  ;;  %v1431_v47 = vadd.f32 %v1429_v20, %v1377_v18 }
 0x1ab   :  { %v1455_v42 = vrot.slane %v2909_v44, 2  ;;  %v1446_v39 = vrot.slane %v2915_v50, 2 }
 0x1ad   :  { %v1456_v19 = vsel %vm522_vm5, %v2909_v44, %v1455_v42  ;;  %v1447_v44 = vsel %vm522_vm5, %v2915_v50, %v1446_v39 }
 0x1ae   :  { %v2923_v38 = vpop.permute.xlu1 %1471  ;;  %v2929_v8 = vpop.permute.xlu0 %1462  ;;  %v1458_v34 = vadd.f32 %v1456_v19, %v1404_v59  ;;  %v1449_v29 = vadd.f32 %v1447_v44, %v1395_v41  ;;  %v1603_v59 = vstv %s2991_s12 }
 0x1af   :  { %v1473_v10 = vrot.slane %v2923_v38, 2  ;;  %v1464_v25 = vrot.slane %v2929_v8, 2 }
 0x1b1   :  { %v1474_v7 = vsel %vm522_vm5, %v2923_v38, %v1473_v10  ;;  %v1465_v54 = vsel %vm522_vm5, %v2929_v8, %v1464_v25 }
 0x1b2   :  { %v1490_v24 = vpop.permute.xlu1 %1489  ;;  %v1481_v17 = vpop.permute.xlu0 %1480  ;;  %v1476_v28 = vadd.f32 %v1474_v7, %v1422_v57 }
 0x1b3   :  { %v1491_v16 = vrot.slane %v1490_v24, 2  ;;  %v1482_v21 = vrot.slane %v1481_v17, 2 }
 0x1b5   :  { %v1492_v56 = vsel %vm577_vm6, %v1490_v24, %v1491_v16  ;;  %v1483_v27 = vsel %vm577_vm6, %v1481_v17, %v1482_v21  ;;  %v1467_v16 = vadd.f32 %v1465_v54, %v1413_v45 }
 0x1b6   :  { %v1508_v58 = vpop.permute.xlu1 %1507  ;;  %v1499_v0 = vpop.permute.xlu0 %1498  ;;  %v1494_v2 = vadd.f32 %v1492_v56, %v1440_v23  ;;  %v1485_v63 = vadd.f32 %v1483_v27, %v1431_v47 }
 0x1b7   :  { %v1509_v14 = vrot.slane %v1508_v58, 2  ;;  %v1500_v60 = vrot.slane %v1499_v0, 2 }
 0x1b9   :  { %v1510_v11 = vsel %vm577_vm6, %v1508_v58, %v1509_v14  ;;  %v1501_v30 = vsel %vm577_vm6, %v1499_v0, %v1500_v60 }
 0x1ba   :  { %v1526_v48 = vpop.permute.xlu1 %1525  ;;  %v1517_v55 = vpop.permute.xlu0 %1516  ;;  %v1512_v43 = vadd.f32 %v1510_v11, %v1458_v34  ;;  %v1503_v61 = vadd.f32 %v1501_v30, %v1449_v29 }
 0x1bb   :  { %v1527_v15 = vrot.slane %v1526_v48, 2  ;;  %v1518_v13 = vrot.slane %v1517_v55, 2 }
 0x1bd   :  { %v1528_v38 = vsel %vm577_vm6, %v1526_v48, %v1527_v15  ;;  %v1519_v37 = vsel %vm577_vm6, %v1517_v55, %v1518_v13 }
 0x1be   :  { %v1544_v6 = vpop.permute.xlu1 %1543  ;;  %v1535_v3 = vpop.permute.xlu0 %1534  ;;  %v1530_v31 = vadd.f32 %v1528_v38, %v1476_v28  ;;  %v1521_v4 = vadd.f32 %v1519_v37, %v1467_v16 }
 0x1bf   :  { %v1545_v26 = vrot.slane %v1544_v6, 2  ;;  %v1536_v24 = vrot.slane %v1535_v3, 2 }
 0x1c1   :  { %v1546_v17 = vsel %vm632_vm7, %v1544_v6, %v1545_v26  ;;  %v1537_v50 = vsel %vm632_vm7, %v1535_v3, %v1536_v24 }
 0x1c2   :  { %v1548_v62 = vadd.f32 %v1546_v17, %v1494_v2  ;;  %v1562_v53 = vpop.permute.xlu1 %1561  ;;  %v1539_v58 = vadd.f32 %v1537_v50, %v1485_v63  ;;  %v1553_v49 = vpop.permute.xlu0 %1552 }
 0x1c3   :  { %v1563_v32 = vrot.slane %v1562_v53, 2  ;;  %v1554_v1 = vrot.slane %v1553_v49, 2 }
 0x1c4   :  { %v1592_v0 = vadd.f32 %v1591_v51, %v1548_v62  ;;  %v1586_v36 = vadd.f32 %v1585_v35, %v1539_v58 }
 0x1c5   :  { %v1564_v42 = vsel %vm632_vm7, %v1562_v53, %v1563_v32  ;;  %v1555_v51 = vsel %vm632_vm7, %v1553_v49, %v1554_v1 }
 0x1c6   :  { %1594 = vst.msk [vmem:[#allocation9 + $0x4] sm:$0xf] %vm2997_vm10, %v1592_v0  ;;  %v1566_v8 = vadd.f32 %v1564_v42, %v1512_v43  ;;  %v1580_v9 = vpop.permute.xlu1 %1579  ;;  %1590 = vst.msk [vmem:[#allocation9] sm:$0xf] %vm2997_vm10, %v1586_v36  ;;  %v1557_v35 = vadd.f32 %v1555_v51, %v1503_v61  ;;  %v1571_v46 = vpop.permute.xlu0 %1570 }
 0x1c7   :  { %v1581_v40 = vrot.slane %v1580_v9, 2  ;;  %v1572_v48 = vrot.slane %v1571_v46, 2 }
 0x1c8   :  { %v1600_v21 = vadd.f32 %v1599_v33, %v1566_v8  ;;  %v1596_v18 = vadd.f32 %v1595_v22, %v1557_v35 }
 0x1c9   :  { %v1582_v52 = vsel %vm632_vm7, %v1580_v9, %v1581_v40  ;;  %v1573_v20 = vsel %vm632_vm7, %v1571_v46, %v1572_v48 }
 0x1ca   :  { %1602 = vst.msk [vmem:[#allocation9 + $0xc] sm:$0xf] %vm2997_vm10, %v1600_v21  ;;  %v1584_v55 = vadd.f32 %v1582_v52, %v1530_v31  ;;  %1598 = vst.msk [vmem:[#allocation9 + $0x8] sm:$0xf] %vm2997_vm10, %v1596_v18  ;;  %v1575_v33 = vadd.f32 %v1573_v20, %v1521_v4 }
 0x1cc   :  { %v1608_v19 = vadd.f32 %v1607_v12, %v1584_v55  ;;  %v1604_v39 = vadd.f32 %v1603_v59, %v1575_v33 }
 0x1ce   :  { %1610 = vst.msk [vmem:[#allocation9 + $0x14] sm:$0xf] %vm2997_vm10, %v1608_v19  ;;  %1606 = vst.msk [vmem:[#allocation9 + $0x10] sm:$0xf] %vm2997_vm10, %v1604_v39 }
 0x1cf   :  { %1868 = shalt.err (!%p1865_p8)
}
 0x1d0   :  { %s1869_s19 = scalar_lea.hbm %s3049_s3, 384 }
 0x1d1   :  { %p1870_p9 = scmp.ne.s32.totalorder %s3049_s3, %s1869_s19  ;;  %p1873_p10 = scmp.lt.u32.totalorder %s1869_s19, %s3049_s3 }
 0x1d3   :  { %p1875_p11 = pnand %p1873_p10, %p1870_p9 }
 0x1d5   :  { %1878 = shalt.err (!%p1875_p11)
}
 0x1d6   :  { %s3087_s22 = smov 4   ;;  %s3088_s14 = smov 64  }
 0x1d7   :  { %1622 = dma.vmem_to_hbm [thread:$0]  %s1617_s16, 384, %s3049_s3, [#allocation4], %s3088_s14, %s3088_s14, %s3087_s22  }
 0x1d8   :  { %1885 = dma.done.wait [#allocation4], 384  }
 0x1d9   :  { %1886 = vsyncadd [#allocation4], 4294966912 }
 0x1da   :  { %1626 = vsyncpa [#allocation3], 1 }
 0x1db   :  { %1627 = vsyncpa [#allocation4], 1 }
 0x1dc   :  { %1628 = vsyncpa [#allocation5], 1 }
 0x1dd   :  { %1629 = vsyncpa [#allocation8], 1 }

</bundles_post_ra>
